<compile_context>
chip_gen: v7x
topology: tpu7x:2x2x1
jax: 0.10.0
libtpu: 0.0.40
codegen_flags: <defaults>
</compile_context>

<pallas_src>
import functools

import jax
import jax.numpy as jnp
from jax.experimental import pallas as pl
from jax.experimental.pallas import tpu as pltpu


# --------------------------------------------------------------------------
# Fused kernel: 3x3 conv (3 GEMMs, K = 3*Cin) + bias + ReLU + 2x2 max-pool
# --------------------------------------------------------------------------
def _conv3x3_bias_relu_pool_kernel(x_ref, w_ref, b_ref, o_ref):
    # x_ref: (2*TP + 2, W, 3*Cin) bf16 -- row window of the kx-folded padded img
    # w_ref: (3, 3*Cin, Cout)     bf16 -- one (3*Cin, Cout) matrix per ky tap
    # b_ref: (1, Cout)            f32
    # o_ref: (TP, W//2, Cout)     f32  -- pooled output rows for this tile
    th_in, wd, k3 = x_ref.shape
    tp, wo, cout = o_ref.shape
    rows = 2 * tp                       # conv-output rows produced per tile

    acc = jnp.zeros((rows * wd, cout), jnp.float32)
    for ky in range(3):                 # static unroll: 3 MXU GEMMs, K = 3*Cin
        xk = x_ref[ky:ky + rows]        # (rows, W, 3*Cin) -- leading-dim slice
        acc = acc + jnp.dot(
            xk.reshape(rows * wd, k3), w_ref[ky],
            preferred_element_type=jnp.float32)

    acc = jnp.maximum(acc + b_ref[...], 0.0)               # bias + ReLU (f32)

    # fused 2x2 / stride-2 max pool (free VPU/XLU filler under the MXU work)
    y = jnp.max(acc.reshape(tp, 2, wd, cout), axis=1)       # pool along H
    y = jnp.max(y.reshape(tp, wo, 2, cout), axis=2)         # pool along W
    o_ref[...] = y


def _pick_row_tile(ho, wd, cout, tp_max):
    """Largest pooled-row tile TP that divides ho, respects tp_max, and keeps
    the f32 conv accumulator (2*TP * W * Cout * 4B) around <= ~4 MiB."""
    budget = max(1, (4 * 1024 * 1024) // max(1, 2 * wd * cout * 4))
    tp = max(1, min(tp_max, ho, budget))
    while ho % tp:
        tp -= 1
    return tp


def conv3x3_bias_relu_pool(x_nhwc, w, b, *, tp_max=64):
    """One encoder stage: 3x3 SAME conv + bias + ReLU + 2x2/s2 max-pool.

    x_nhwc: (N, H, W, Cin) f32; w: (3, 3, Cin, Cout); b: (Cout,).
    Returns (N, H//2, W//2, Cout) f32.
    """
    n, h, wd, cin = x_nhwc.shape
    cout = w.shape[-1]
    assert h % 2 == 0 and wd % 2 == 0, "encoder stages expect even H, W"
    ho, wo = h // 2, wd // 2

    tp = _pick_row_tile(ho, wd, cout, tp_max)
    nj = ho // tp
    th_in = 2 * tp + 2                  # padded input rows needed per tile

    # ---- plain-JAX glue: layout prep only --------------------------------
    xb = x_nhwc.astype(jnp.bfloat16)                          # MXU-friendly
    xp = jnp.pad(xb, ((0, 0), (1, 1), (1, 1), (0, 0)))        # SAME zero-pad
    # fold the 3 kx taps into the contraction dim: (N, H+2, W, 3*Cin)
    xc = jnp.concatenate([xp[:, :, kx:kx + wd, :] for kx in range(3)], axis=-1)
    # overlapping row windows (2-row halo) so BlockSpec tiles never overlap
    xwin = jnp.stack(
        [xc[:, 2 * tp * j: 2 * tp * j + th_in] for j in range(nj)], axis=1
    )                                   # (N, nj, 2*TP+2, W, 3*Cin)
    w9 = w.reshape(3, 3 * cin, cout).astype(jnp.bfloat16)     # per-ky K-fold
    b2 = b.reshape(1, cout).astype(jnp.float32)

    return pl.pallas_call(
        _conv3x3_bias_relu_pool_kernel,
        out_shape=jax.ShapeDtypeStruct((n, ho, wo, cout), jnp.float32),
        grid=(n, nj),
        in_specs=[
            # activation row-window; constant index maps below keep weights
            # and bias resident across the whole grid
            pl.BlockSpec((None, None, th_in, wd, 3 * cin),
                         lambda i, j: (i, j, 0, 0, 0)),
            pl.BlockSpec((3, 3 * cin, cout), lambda i, j: (0, 0, 0)),
            pl.BlockSpec((1, cout), lambda i, j: (0, 0)),
        ],
        out_specs=pl.BlockSpec((None, tp, wo, cout),
                               lambda i, j: (i, j, 0, 0)),
        compiler_params=pltpu.CompilerParams(
            dimension_semantics=("parallel", "parallel"),
            vmem_limit_bytes=32 * 1024 * 1024,
        ),
    )(xwin, w9, b2)


# --------------------------------------------------------------------------
# Synthetic encoder = FeatureExtraction.model (stands in for get_encoder)
# --------------------------------------------------------------------------
def init_encoder_params(key, in_channels=3, stage_channels=(64, 128, 128)):
    params = []
    cin = in_channels
    for i, cout in enumerate(stage_channels):
        kw, kb = jax.random.split(jax.random.fold_in(key, i))
        w = jax.random.normal(kw, (3, 3, cin, cout), jnp.float32) * 0.1
        b = jax.random.normal(kb, (cout,), jnp.float32) * 0.01
        params.append((w, b))
        cin = cout
    return params


@functools.partial(jax.jit, static_argnames=("tp_max",))
def feature_extraction_forward(params, image_batch_nchw, *, tp_max=64):
    """Forward of FeatureExtraction. Input NCHW (like PyTorch), output NCHW."""
    # freeze=True in the torch module -> parameters are constants here.
    x = jnp.transpose(image_batch_nchw, (0, 2, 3, 1)).astype(jnp.float32)
    for w, b in params:
        x = conv3x3_bias_relu_pool(x, w, b, tp_max=tp_max)
    return jnp.transpose(x, (0, 3, 1, 2))


# --------------------------------------------------------------------------
# Pure-JAX reference (same bf16-in / f32-accumulate numerics)
# --------------------------------------------------------------------------
def reference_forward(params, image_batch_nchw):
    x = jnp.transpose(image_batch_nchw, (0, 2, 3, 1)).astype(jnp.float32)
    for w, b in params:
        y = jax.lax.conv_general_dilated(
            x.astype(jnp.bfloat16), w.astype(jnp.bfloat16),
            window_strides=(1, 1), padding="SAME",
            dimension_numbers=("NHWC", "HWIO", "NHWC"),
            preferred_element_type=jnp.float32)
        y = jnp.maximum(y + b.reshape(1, 1, 1, -1), 0.0)
        x = jax.lax.reduce_window(
            y, -jnp.inf, jax.lax.max, (1, 2, 2, 1), (1, 2, 2, 1), "VALID")
    return jnp.transpose(x, (0, 3, 1, 2))


if __name__ == "__main__":
    key = jax.random.PRNGKey(0)
    k_img, k_par = jax.random.split(key)

    # image_batch: NCHW, batch=2, in_channels=3, spatial=16x16
    image_batch = jax.random.normal(k_img, (2, 3, 16, 16), jnp.float32)
    params = init_encoder_params(k_par, in_channels=3,
                                 stage_channels=(64, 128, 128))

    # tp_max=4 -> stage 1 runs a (N=2, row_tiles=2) grid (exercises tiling)
    feats = feature_extraction_forward(params, image_batch, tp_max=4)
    feats = jax.block_until_ready(feats)

    ref = jax.block_until_ready(reference_forward(params, image_batch))
    assert feats.shape == ref.shape == (2, 128, 2, 2), feats.shape
    max_err = float(jnp.max(jnp.abs(feats - ref)))
    assert jnp.allclose(feats, ref, atol=2e-2, rtol=2e-2), max_err

    print("KERNEL_OK")
</pallas_src>

<mosaic_0001>
module attributes {stable_mosaic.version = 11 : i64} {
  func.func @_conv3x3_bias_relu_pool_kernel(%arg0: i32, %arg1: i32, %arg2: memref<1x1x10x16x9xbf16, #tpu.memory_space<vmem>>, %arg3: memref<3x9x64xbf16, #tpu.memory_space<vmem>>, %arg4: memref<1x64xf32, #tpu.memory_space<vmem>>, %arg5: memref<1x4x8x64xf32, #tpu.memory_space<vmem>>) attributes {dimension_semantics = [#tpu.dimension_semantics<parallel>, #tpu.dimension_semantics<parallel>], iteration_bounds = array<i64: 2, 2>, scalar_prefetch = 0 : i64, scratch_operands = 0 : i64, tpu.core_type = #tpu.core_type<tc>, window_params = [{transform_indices = @transform_0, window_bounds = array<i64: 1, 1, 10, 16, 9>}, {pipeline_mode = #tpu.pipeline_mode<synchronous>, transform_indices = @transform_1, window_bounds = array<i64: 3, 9, 64>}, {pipeline_mode = #tpu.pipeline_mode<synchronous>, transform_indices = @transform_2, window_bounds = array<i64: 1, 64>}, {transform_indices = @transform_3, window_bounds = array<i64: 1, 4, 8, 64>}]} {
    %cst = arith.constant 0.000000e+00 : f32
    %0 = vector.broadcast %cst : f32 to vector<128x64xf32>
    %c0 = arith.constant 0 : index
    %c0_0 = arith.constant 0 : index
    %c0_1 = arith.constant 0 : index
    %c0_2 = arith.constant 0 : index
    %c0_3 = arith.constant 0 : index
    %1 = vector.load %arg2[%c0, %c0_0, %c0_1, %c0_2, %c0_3] : memref<1x1x10x16x9xbf16, #tpu.memory_space<vmem>>, vector<1x1x8x16x9xbf16>
    %2 = vector.shape_cast %1 : vector<1x1x8x16x9xbf16> to vector<8x16x9xbf16>
    %3 = vector.shape_cast %2 : vector<8x16x9xbf16> to vector<128x9xbf16>
    %c0_4 = arith.constant 0 : index
    %c0_5 = arith.constant 0 : index
    %c0_6 = arith.constant 0 : index
    %4 = vector.load %arg3[%c0_4, %c0_5, %c0_6] : memref<3x9x64xbf16, #tpu.memory_space<vmem>>, vector<1x9x64xbf16>
    %5 = vector.shape_cast %4 : vector<1x9x64xbf16> to vector<9x64xbf16>
    %cst_7 = arith.constant dense<0.000000e+00> : vector<128x64xf32>
    %6 = tpu.matmul %3, %5, %cst_7 {dimension_numbers = #tpu.dot_dimension_numbers<[1], [0], [0], [1], [0, 0, 1, 1], [], []>} : vector<128x9xbf16>, vector<9x64xbf16>, vector<128x64xf32> -> vector<128x64xf32>
    %7 = arith.addf %0, %6 : vector<128x64xf32>
    %c0_8 = arith.constant 0 : index
    %c0_9 = arith.constant 0 : index
    %c1 = arith.constant 1 : index
    %c0_10 = arith.constant 0 : index
    %c0_11 = arith.constant 0 : index
    %8 = vector.load %arg2[%c0_8, %c0_9, %c1, %c0_10, %c0_11] : memref<1x1x10x16x9xbf16, #tpu.memory_space<vmem>>, vector<1x1x8x16x9xbf16>
    %9 = vector.shape_cast %8 : vector<1x1x8x16x9xbf16> to vector<8x16x9xbf16>
    %10 = vector.shape_cast %9 : vector<8x16x9xbf16> to vector<128x9xbf16>
    %c1_12 = arith.constant 1 : index
    %c0_13 = arith.constant 0 : index
    %c0_14 = arith.constant 0 : index
    %11 = vector.load %arg3[%c1_12, %c0_13, %c0_14] : memref<3x9x64xbf16, #tpu.memory_space<vmem>>, vector<1x9x64xbf16>
    %12 = vector.shape_cast %11 : vector<1x9x64xbf16> to vector<9x64xbf16>
    %cst_15 = arith.constant dense<0.000000e+00> : vector<128x64xf32>
    %13 = tpu.matmul %10, %12, %cst_15 {dimension_numbers = #tpu.dot_dimension_numbers<[1], [0], [0], [1], [0, 0, 1, 1], [], []>} : vector<128x9xbf16>, vector<9x64xbf16>, vector<128x64xf32> -> vector<128x64xf32>
    %14 = arith.addf %7, %13 : vector<128x64xf32>
    %c0_16 = arith.constant 0 : index
    %c0_17 = arith.constant 0 : index
    %c2 = arith.constant 2 : index
    %c0_18 = arith.constant 0 : index
    %c0_19 = arith.constant 0 : index
    %15 = vector.load %arg2[%c0_16, %c0_17, %c2, %c0_18, %c0_19] : memref<1x1x10x16x9xbf16, #tpu.memory_space<vmem>>, vector<1x1x8x16x9xbf16>
    %16 = vector.shape_cast %15 : vector<1x1x8x16x9xbf16> to vector<8x16x9xbf16>
    %17 = vector.shape_cast %16 : vector<8x16x9xbf16> to vector<128x9xbf16>
    %c2_20 = arith.constant 2 : index
    %c0_21 = arith.constant 0 : index
    %c0_22 = arith.constant 0 : index
    %18 = vector.load %arg3[%c2_20, %c0_21, %c0_22] : memref<3x9x64xbf16, #tpu.memory_space<vmem>>, vector<1x9x64xbf16>
    %19 = vector.shape_cast %18 : vector<1x9x64xbf16> to vector<9x64xbf16>
    %cst_23 = arith.constant dense<0.000000e+00> : vector<128x64xf32>
    %20 = tpu.matmul %17, %19, %cst_23 {dimension_numbers = #tpu.dot_dimension_numbers<[1], [0], [0], [1], [0, 0, 1, 1], [], []>} : vector<128x9xbf16>, vector<9x64xbf16>, vector<128x64xf32> -> vector<128x64xf32>
    %21 = arith.addf %14, %20 : vector<128x64xf32>
    %c0_24 = arith.constant 0 : index
    %c0_25 = arith.constant 0 : index
    %22 = vector.load %arg4[%c0_24, %c0_25] : memref<1x64xf32, #tpu.memory_space<vmem>>, vector<1x64xf32>
    %23 = vector.broadcast %22 : vector<1x64xf32> to vector<128x64xf32>
    %24 = arith.addf %21, %23 : vector<128x64xf32>
    %cst_26 = arith.constant 0.000000e+00 : f32
    %25 = vector.broadcast %cst_26 : f32 to vector<128x64xf32>
    %26 = arith.maximumf %24, %25 : vector<128x64xf32>
    %27 = vector.shape_cast %26 : vector<128x64xf32> to vector<4x2x16x64xf32>
    %cst_27 = arith.constant dense<0xFF800000> : vector<4x16x64xf32>
    %28 = vector.multi_reduction <maximumf>, %27, %cst_27 [1] : vector<4x2x16x64xf32> to vector<4x16x64xf32>
    %29 = vector.shape_cast %28 : vector<4x16x64xf32> to vector<4x8x2x64xf32>
    %cst_28 = arith.constant dense<0xFF800000> : vector<4x8x64xf32>
    %30 = vector.multi_reduction <maximumf>, %29, %cst_28 [2] : vector<4x8x2x64xf32> to vector<4x8x64xf32>
    %c0_29 = arith.constant 0 : index
    %c0_30 = arith.constant 0 : index
    %c0_31 = arith.constant 0 : index
    %c0_32 = arith.constant 0 : index
    %31 = vector.load %arg5[%c0_29, %c0_30, %c0_31, %c0_32] : memref<1x4x8x64xf32, #tpu.memory_space<vmem>>, vector<1x4x8x64xf32>
    %32 = vector.shape_cast %31 : vector<1x4x8x64xf32> to vector<4x8x64xf32>
    %33 = vector.shape_cast %30 : vector<4x8x64xf32> to vector<1x4x8x64xf32>
    tpu.vector_store %arg5[%c0_29, %c0_30, %c0_31, %c0_32], %33 {strides = array<i32>} : memref<1x4x8x64xf32, #tpu.memory_space<vmem>>, vector<1x4x8x64xf32>,
    return
  }
  func.func @transform_0(%arg0: i32, %arg1: i32) -> (i32, i32, i32, i32, i32) {
    %c0_i32 = arith.constant 0 : i32
    %c0_i32_0 = arith.constant 0 : i32
    %c0_i32_1 = arith.constant 0 : i32
    %c0_i32_2 = arith.constant 0 : i32
    return %arg0, %arg1, %c0_i32, %c0_i32_0, %c0_i32_1 : i32, i32, i32, i32, i32
  }
  func.func @transform_1(%arg0: i32, %arg1: i32) -> (i32, i32, i32) {
    %c0_i32 = arith.constant 0 : i32
    %c0_i32_0 = arith.constant 0 : i32
    %c0_i32_1 = arith.constant 0 : i32
    %c0_i32_2 = arith.constant 0 : i32
    return %c0_i32, %c0_i32_0, %c0_i32_1 : i32, i32, i32
  }
  func.func @transform_2(%arg0: i32, %arg1: i32) -> (i32, i32) {
    %c0_i32 = arith.constant 0 : i32
    %c0_i32_0 = arith.constant 0 : i32
    %c0_i32_1 = arith.constant 0 : i32
    return %c0_i32, %c0_i32_0 : i32, i32
  }
  func.func @transform_3(%arg0: i32, %arg1: i32) -> (i32, i32, i32, i32) {
    %c0_i32 = arith.constant 0 : i32
    %c0_i32_0 = arith.constant 0 : i32
    %c0_i32_1 = arith.constant 0 : i32
    return %arg0, %arg1, %c0_i32, %c0_i32_0 : i32, i32, i32, i32
  }
}

module attributes {stable_mosaic.version = 11 : i64} {
  func.func @_conv3x3_bias_relu_pool_kernel(%arg0: i32, %arg1: i32, %arg2: memref<1x1x10x8x192xbf16, #tpu.memory_space<vmem>>, %arg3: memref<3x192x128xbf16, #tpu.memory_space<vmem>>, %arg4: memref<1x128xf32, #tpu.memory_space<vmem>>, %arg5: memref<1x4x4x128xf32, #tpu.memory_space<vmem>>) attributes {dimension_semantics = [#tpu.dimension_semantics<parallel>, #tpu.dimension_semantics<parallel>], iteration_bounds = array<i64: 2, 1>, scalar_prefetch = 0 : i64, scratch_operands = 0 : i64, tpu.core_type = #tpu.core_type<tc>, window_params = [{transform_indices = @transform_0, window_bounds = array<i64: 1, 1, 10, 8, 192>}, {pipeline_mode = #tpu.pipeline_mode<synchronous>, transform_indices = @transform_1, window_bounds = array<i64: 3, 192, 128>}, {pipeline_mode = #tpu.pipeline_mode<synchronous>, transform_indices = @transform_2, window_bounds = array<i64: 1, 128>}, {transform_indices = @transform_3, window_bounds = array<i64: 1, 4, 4, 128>}]} {
    %cst = arith.constant 0.000000e+00 : f32
    %0 = vector.broadcast %cst : f32 to vector<64x128xf32>
    %c0 = arith.constant 0 : index
    %c0_0 = arith.constant 0 : index
    %c0_1 = arith.constant 0 : index
    %c0_2 = arith.constant 0 : index
    %c0_3 = arith.constant 0 : index
    %1 = vector.load %arg2[%c0, %c0_0, %c0_1, %c0_2, %c0_3] : memref<1x1x10x8x192xbf16, #tpu.memory_space<vmem>>, vector<1x1x8x8x192xbf16>
    %2 = vector.shape_cast %1 : vector<1x1x8x8x192xbf16> to vector<8x8x192xbf16>
    %3 = vector.shape_cast %2 : vector<8x8x192xbf16> to vector<64x192xbf16>
    %c0_4 = arith.constant 0 : index
    %c0_5 = arith.constant 0 : index
    %c0_6 = arith.constant 0 : index
    %4 = vector.load %arg3[%c0_4, %c0_5, %c0_6] : memref<3x192x128xbf16, #tpu.memory_space<vmem>>, vector<1x192x128xbf16>
    %5 = vector.shape_cast %4 : vector<1x192x128xbf16> to vector<192x128xbf16>
    %cst_7 = arith.constant dense<0.000000e+00> : vector<64x128xf32>
    %6 = tpu.matmul %3, %5, %cst_7 {dimension_numbers = #tpu.dot_dimension_numbers<[1], [0], [0], [1], [0, 0, 1, 1], [], []>} : vector<64x192xbf16>, vector<192x128xbf16>, vector<64x128xf32> -> vector<64x128xf32>
    %7 = arith.addf %0, %6 : vector<64x128xf32>
    %c0_8 = arith.constant 0 : index
    %c0_9 = arith.constant 0 : index
    %c1 = arith.constant 1 : index
    %c0_10 = arith.constant 0 : index
    %c0_11 = arith.constant 0 : index
    %8 = vector.load %arg2[%c0_8, %c0_9, %c1, %c0_10, %c0_11] : memref<1x1x10x8x192xbf16, #tpu.memory_space<vmem>>, vector<1x1x8x8x192xbf16>
    %9 = vector.shape_cast %8 : vector<1x1x8x8x192xbf16> to vector<8x8x192xbf16>
    %10 = vector.shape_cast %9 : vector<8x8x192xbf16> to vector<64x192xbf16>
    %c1_12 = arith.constant 1 : index
    %c0_13 = arith.constant 0 : index
    %c0_14 = arith.constant 0 : index
    %11 = vector.load %arg3[%c1_12, %c0_13, %c0_14] : memref<3x192x128xbf16, #tpu.memory_space<vmem>>, vector<1x192x128xbf16>
    %12 = vector.shape_cast %11 : vector<1x192x128xbf16> to vector<192x128xbf16>
    %cst_15 = arith.constant dense<0.000000e+00> : vector<64x128xf32>
    %13 = tpu.matmul %10, %12, %cst_15 {dimension_numbers = #tpu.dot_dimension_numbers<[1], [0], [0], [1], [0, 0, 1, 1], [], []>} : vector<64x192xbf16>, vector<192x128xbf16>, vector<64x128xf32> -> vector<64x128xf32>
    %14 = arith.addf %7, %13 : vector<64x128xf32>
    %c0_16 = arith.constant 0 : index
    %c0_17 = arith.constant 0 : index
    %c2 = arith.constant 2 : index
    %c0_18 = arith.constant 0 : index
    %c0_19 = arith.constant 0 : index
    %15 = vector.load %arg2[%c0_16, %c0_17, %c2, %c0_18, %c0_19] : memref<1x1x10x8x192xbf16, #tpu.memory_space<vmem>>, vector<1x1x8x8x192xbf16>
    %16 = vector.shape_cast %15 : vector<1x1x8x8x192xbf16> to vector<8x8x192xbf16>
    %17 = vector.shape_cast %16 : vector<8x8x192xbf16> to vector<64x192xbf16>
    %c2_20 = arith.constant 2 : index
    %c0_21 = arith.constant 0 : index
    %c0_22 = arith.constant 0 : index
    %18 = vector.load %arg3[%c2_20, %c0_21, %c0_22] : memref<3x192x128xbf16, #tpu.memory_space<vmem>>, vector<1x192x128xbf16>
    %19 = vector.shape_cast %18 : vector<1x192x128xbf16> to vector<192x128xbf16>
    %cst_23 = arith.constant dense<0.000000e+00> : vector<64x128xf32>
    %20 = tpu.matmul %17, %19, %cst_23 {dimension_numbers = #tpu.dot_dimension_numbers<[1], [0], [0], [1], [0, 0, 1, 1], [], []>} : vector<64x192xbf16>, vector<192x128xbf16>, vector<64x128xf32> -> vector<64x128xf32>
    %21 = arith.addf %14, %20 : vector<64x128xf32>
    %c0_24 = arith.constant 0 : index
    %c0_25 = arith.constant 0 : index
    %22 = vector.load %arg4[%c0_24, %c0_25] : memref<1x128xf32, #tpu.memory_space<vmem>>, vector<1x128xf32>
    %23 = vector.broadcast %22 : vector<1x128xf32> to vector<64x128xf32>
    %24 = arith.addf %21, %23 : vector<64x128xf32>
    %cst_26 = arith.constant 0.000000e+00 : f32
    %25 = vector.broadcast %cst_26 : f32 to vector<64x128xf32>
    %26 = arith.maximumf %24, %25 : vector<64x128xf32>
    %27 = vector.shape_cast %26 : vector<64x128xf32> to vector<4x2x8x128xf32>
    %cst_27 = arith.constant dense<0xFF800000> : vector<4x8x128xf32>
    %28 = vector.multi_reduction <maximumf>, %27, %cst_27 [1] : vector<4x2x8x128xf32> to vector<4x8x128xf32>
    %29 = vector.shape_cast %28 : vector<4x8x128xf32> to vector<4x4x2x128xf32>
    %cst_28 = arith.constant dense<0xFF800000> : vector<4x4x128xf32>
    %30 = vector.multi_reduction <maximumf>, %29, %cst_28 [2] : vector<4x4x2x128xf32> to vector<4x4x128xf32>
    %c0_29 = arith.constant 0 : index
    %c0_30 = arith.constant 0 : index
    %c0_31 = arith.constant 0 : index
    %c0_32 = arith.constant 0 : index
    %31 = vector.load %arg5[%c0_29, %c0_30, %c0_31, %c0_32] : memref<1x4x4x128xf32, #tpu.memory_space<vmem>>, vector<1x4x4x128xf32>
    %32 = vector.shape_cast %31 : vector<1x4x4x128xf32> to vector<4x4x128xf32>
    %33 = vector.shape_cast %30 : vector<4x4x128xf32> to vector<1x4x4x128xf32>
    tpu.vector_store %arg5[%c0_29, %c0_30, %c0_31, %c0_32], %33 {strides = array<i32>} : memref<1x4x4x128xf32, #tpu.memory_space<vmem>>, vector<1x4x4x128xf32>,
    return
  }
  func.func @transform_0(%arg0: i32, %arg1: i32) -> (i32, i32, i32, i32, i32) {
    %c0_i32 = arith.constant 0 : i32
    %c0_i32_0 = arith.constant 0 : i32
    %c0_i32_1 = arith.constant 0 : i32
    %c0_i32_2 = arith.constant 0 : i32
    return %arg0, %arg1, %c0_i32, %c0_i32_0, %c0_i32_1 : i32, i32, i32, i32, i32
  }
  func.func @transform_1(%arg0: i32, %arg1: i32) -> (i32, i32, i32) {
    %c0_i32 = arith.constant 0 : i32
    %c0_i32_0 = arith.constant 0 : i32
    %c0_i32_1 = arith.constant 0 : i32
    %c0_i32_2 = arith.constant 0 : i32
    return %c0_i32, %c0_i32_0, %c0_i32_1 : i32, i32, i32
  }
  func.func @transform_2(%arg0: i32, %arg1: i32) -> (i32, i32) {
    %c0_i32 = arith.constant 0 : i32
    %c0_i32_0 = arith.constant 0 : i32
    %c0_i32_1 = arith.constant 0 : i32
    return %c0_i32, %c0_i32_0 : i32, i32
  }
  func.func @transform_3(%arg0: i32, %arg1: i32) -> (i32, i32, i32, i32) {
    %c0_i32 = arith.constant 0 : i32
    %c0_i32_0 = arith.constant 0 : i32
    %c0_i32_1 = arith.constant 0 : i32
    return %arg0, %arg1, %c0_i32, %c0_i32_0 : i32, i32, i32, i32
  }
}

module attributes {stable_mosaic.version = 11 : i64} {
  func.func @_conv3x3_bias_relu_pool_kernel(%arg0: i32, %arg1: i32, %arg2: memref<1x1x6x4x384xbf16, #tpu.memory_space<vmem>>, %arg3: memref<3x384x128xbf16, #tpu.memory_space<vmem>>, %arg4: memref<1x128xf32, #tpu.memory_space<vmem>>, %arg5: memref<1x2x2x128xf32, #tpu.memory_space<vmem>>) attributes {dimension_semantics = [#tpu.dimension_semantics<parallel>, #tpu.dimension_semantics<parallel>], iteration_bounds = array<i64: 2, 1>, scalar_prefetch = 0 : i64, scratch_operands = 0 : i64, tpu.core_type = #tpu.core_type<tc>, window_params = [{transform_indices = @transform_0, window_bounds = array<i64: 1, 1, 6, 4, 384>}, {pipeline_mode = #tpu.pipeline_mode<synchronous>, transform_indices = @transform_1, window_bounds = array<i64: 3, 384, 128>}, {pipeline_mode = #tpu.pipeline_mode<synchronous>, transform_indices = @transform_2, window_bounds = array<i64: 1, 128>}, {transform_indices = @transform_3, window_bounds = array<i64: 1, 2, 2, 128>}]} {
    %cst = arith.constant 0.000000e+00 : f32
    %0 = vector.broadcast %cst : f32 to vector<16x128xf32>
    %c0 = arith.constant 0 : index
    %c0_0 = arith.constant 0 : index
    %c0_1 = arith.constant 0 : index
    %c0_2 = arith.constant 0 : index
    %c0_3 = arith.constant 0 : index
    %1 = vector.load %arg2[%c0, %c0_0, %c0_1, %c0_2, %c0_3] : memref<1x1x6x4x384xbf16, #tpu.memory_space<vmem>>, vector<1x1x4x4x384xbf16>
    %2 = vector.shape_cast %1 : vector<1x1x4x4x384xbf16> to vector<4x4x384xbf16>
    %3 = vector.shape_cast %2 : vector<4x4x384xbf16> to vector<16x384xbf16>
    %c0_4 = arith.constant 0 : index
    %c0_5 = arith.constant 0 : index
    %c0_6 = arith.constant 0 : index
    %4 = vector.load %arg3[%c0_4, %c0_5, %c0_6] : memref<3x384x128xbf16, #tpu.memory_space<vmem>>, vector<1x384x128xbf16>
    %5 = vector.shape_cast %4 : vector<1x384x128xbf16> to vector<384x128xbf16>
    %cst_7 = arith.constant dense<0.000000e+00> : vector<16x128xf32>
    %6 = tpu.matmul %3, %5, %cst_7 {dimension_numbers = #tpu.dot_dimension_numbers<[1], [0], [0], [1], [0, 0, 1, 1], [], []>} : vector<16x384xbf16>, vector<384x128xbf16>, vector<16x128xf32> -> vector<16x128xf32>
    %7 = arith.addf %0, %6 : vector<16x128xf32>
    %c0_8 = arith.constant 0 : index
    %c0_9 = arith.constant 0 : index
    %c1 = arith.constant 1 : index
    %c0_10 = arith.constant 0 : index
    %c0_11 = arith.constant 0 : index
    %8 = vector.load %arg2[%c0_8, %c0_9, %c1, %c0_10, %c0_11] : memref<1x1x6x4x384xbf16, #tpu.memory_space<vmem>>, vector<1x1x4x4x384xbf16>
    %9 = vector.shape_cast %8 : vector<1x1x4x4x384xbf16> to vector<4x4x384xbf16>
    %10 = vector.shape_cast %9 : vector<4x4x384xbf16> to vector<16x384xbf16>
    %c1_12 = arith.constant 1 : index
    %c0_13 = arith.constant 0 : index
    %c0_14 = arith.constant 0 : index
    %11 = vector.load %arg3[%c1_12, %c0_13, %c0_14] : memref<3x384x128xbf16, #tpu.memory_space<vmem>>, vector<1x384x128xbf16>
    %12 = vector.shape_cast %11 : vector<1x384x128xbf16> to vector<384x128xbf16>
    %cst_15 = arith.constant dense<0.000000e+00> : vector<16x128xf32>
    %13 = tpu.matmul %10, %12, %cst_15 {dimension_numbers = #tpu.dot_dimension_numbers<[1], [0], [0], [1], [0, 0, 1, 1], [], []>} : vector<16x384xbf16>, vector<384x128xbf16>, vector<16x128xf32> -> vector<16x128xf32>
    %14 = arith.addf %7, %13 : vector<16x128xf32>
    %c0_16 = arith.constant 0 : index
    %c0_17 = arith.constant 0 : index
    %c2 = arith.constant 2 : index
    %c0_18 = arith.constant 0 : index
    %c0_19 = arith.constant 0 : index
    %15 = vector.load %arg2[%c0_16, %c0_17, %c2, %c0_18, %c0_19] : memref<1x1x6x4x384xbf16, #tpu.memory_space<vmem>>, vector<1x1x4x4x384xbf16>
    %16 = vector.shape_cast %15 : vector<1x1x4x4x384xbf16> to vector<4x4x384xbf16>
    %17 = vector.shape_cast %16 : vector<4x4x384xbf16> to vector<16x384xbf16>
    %c2_20 = arith.constant 2 : index
    %c0_21 = arith.constant 0 : index
    %c0_22 = arith.constant 0 : index
    %18 = vector.load %arg3[%c2_20, %c0_21, %c0_22] : memref<3x384x128xbf16, #tpu.memory_space<vmem>>, vector<1x384x128xbf16>
    %19 = vector.shape_cast %18 : vector<1x384x128xbf16> to vector<384x128xbf16>
    %cst_23 = arith.constant dense<0.000000e+00> : vector<16x128xf32>
    %20 = tpu.matmul %17, %19, %cst_23 {dimension_numbers = #tpu.dot_dimension_numbers<[1], [0], [0], [1], [0, 0, 1, 1], [], []>} : vector<16x384xbf16>, vector<384x128xbf16>, vector<16x128xf32> -> vector<16x128xf32>
    %21 = arith.addf %14, %20 : vector<16x128xf32>
    %c0_24 = arith.constant 0 : index
    %c0_25 = arith.constant 0 : index
    %22 = vector.load %arg4[%c0_24, %c0_25] : memref<1x128xf32, #tpu.memory_space<vmem>>, vector<1x128xf32>
    %23 = vector.broadcast %22 : vector<1x128xf32> to vector<16x128xf32>
    %24 = arith.addf %21, %23 : vector<16x128xf32>
    %cst_26 = arith.constant 0.000000e+00 : f32
    %25 = vector.broadcast %cst_26 : f32 to vector<16x128xf32>
    %26 = arith.maximumf %24, %25 : vector<16x128xf32>
    %27 = vector.shape_cast %26 : vector<16x128xf32> to vector<2x2x4x128xf32>
    %cst_27 = arith.constant dense<0xFF800000> : vector<2x4x128xf32>
    %28 = vector.multi_reduction <maximumf>, %27, %cst_27 [1] : vector<2x2x4x128xf32> to vector<2x4x128xf32>
    %29 = vector.shape_cast %28 : vector<2x4x128xf32> to vector<2x2x2x128xf32>
    %cst_28 = arith.constant dense<0xFF800000> : vector<2x2x128xf32>
    %30 = vector.multi_reduction <maximumf>, %29, %cst_28 [2] : vector<2x2x2x128xf32> to vector<2x2x128xf32>
    %c0_29 = arith.constant 0 : index
    %c0_30 = arith.constant 0 : index
    %c0_31 = arith.constant 0 : index
    %c0_32 = arith.constant 0 : index
    %31 = vector.load %arg5[%c0_29, %c0_30, %c0_31, %c0_32] : memref<1x2x2x128xf32, #tpu.memory_space<vmem>>, vector<1x2x2x128xf32>
    %32 = vector.shape_cast %31 : vector<1x2x2x128xf32> to vector<2x2x128xf32>
    %33 = vector.shape_cast %30 : vector<2x2x128xf32> to vector<1x2x2x128xf32>
    tpu.vector_store %arg5[%c0_29, %c0_30, %c0_31, %c0_32], %33 {strides = array<i32>} : memref<1x2x2x128xf32, #tpu.memory_space<vmem>>, vector<1x2x2x128xf32>,
    return
  }
  func.func @transform_0(%arg0: i32, %arg1: i32) -> (i32, i32, i32, i32, i32) {
    %c0_i32 = arith.constant 0 : i32
    %c0_i32_0 = arith.constant 0 : i32
    %c0_i32_1 = arith.constant 0 : i32
    %c0_i32_2 = arith.constant 0 : i32
    return %arg0, %arg1, %c0_i32, %c0_i32_0, %c0_i32_1 : i32, i32, i32, i32, i32
  }
  func.func @transform_1(%arg0: i32, %arg1: i32) -> (i32, i32, i32) {
    %c0_i32 = arith.constant 0 : i32
    %c0_i32_0 = arith.constant 0 : i32
    %c0_i32_1 = arith.constant 0 : i32
    %c0_i32_2 = arith.constant 0 : i32
    return %c0_i32, %c0_i32_0, %c0_i32_1 : i32, i32, i32
  }
  func.func @transform_2(%arg0: i32, %arg1: i32) -> (i32, i32) {
    %c0_i32 = arith.constant 0 : i32
    %c0_i32_0 = arith.constant 0 : i32
    %c0_i32_1 = arith.constant 0 : i32
    return %c0_i32, %c0_i32_0 : i32, i32
  }
  func.func @transform_3(%arg0: i32, %arg1: i32) -> (i32, i32, i32, i32) {
    %c0_i32 = arith.constant 0 : i32
    %c0_i32_0 = arith.constant 0 : i32
    %c0_i32_1 = arith.constant 0 : i32
    return %arg0, %arg1, %c0_i32, %c0_i32_0 : i32, i32, i32, i32
  }
}

</mosaic_0001>

<bundles_post_ra>
// kernel: feature_extraction_forward.4
= control target key start
LH: loop header
LB: loop body
LE: loop exit
PB: predicated region body
PF: predicated region fallthrough
CT: control target
= control target key end

     0   :  { %s1529_s12 = smov 0   ;;  %s1531_s13 = smov 0   ;;  %s1834_s0 = inlined_call_operand.vmem [shape: bf16[2,1,10,8,192], index: 0, kind: input, shape index: {}]   ;;  %s1835_s1 = inlined_call_operand.vmem [shape: bf16[3,192,128], index: 1, kind: input, shape index: {}]   ;;  %s1836_s2 = inlined_call_operand.vmem [shape: f32[1,128], index: 2, kind: input, shape index: {}]   ;;  %s1837_s3 = inlined_call_operand.vmem [shape: f32[2,4,4,128], index: 3, kind: output, shape index: {}]  }
   0x1   :  { %s1533_s14 = smov 0  }
   0x2 LB: > { %s25_s15 = sadd.s32 1, %s1501_s13  ;;  %p1234_p0 = scmp.ge.s32.totalorder %s1505_s14, 1  ;;  %s1505_s14 = sphi %s1533_s14, %s13_s14   ;;  %s1501_s13 = sphi %s1531_s13, %s1839_s13   ;;  %s1497_s12 = sphi %s1529_s12, %s1838_s12  }
   0x3   : > { %p27_p1 = scmp.ge.s32.totalorder %s25_s15, 2  ;;  %p157_p2 = scmp.lt.s32.totalorder %s1505_s14, 3 }
   0x5   : > { %s1841_s15 = smov (%p27_p1, %s25_s15), 0  ;;  %p158_p3 = pnand %p1234_p0, %p157_p2 }
   0x6   : > { %v1429_v0 = vld [vmem:[%s1835_s1 + $0x60] sm:$0xff] (!%p158_p3)   ;;  %v1507_v1 = vmov (!%p158_p3), 0   ;;  %v1431_v3 = vld [vmem:[%s1835_s1 + $0x68] sm:$0xff] (!%p158_p3)   ;;  %v1433_v5 = vld [vmem:[%s1835_s1 + $0x70] sm:$0xff] (!%p158_p3)   ;;  %p189_p4 = scmp.lt.s32.totalorder (!%p158_p3), %s1497_s12, 1  ;;  %vm383_vm0 = vcmask (!%p158_p3), 523264  }
   0x7   : > { %161 = sbr.rel (%p158_p3) target bundleno = 371 (0x173), region = 32  ;;  %396 = vmatprep.subr.bf16.mxu0 (!%p158_p3), %v1507_v1  ;;  %581 = vmatprep.subr.bf16.mxu1 (!%p158_p3), %v1507_v1  ;;  %v1430_v2 = vld [vmem:[%s1835_s1] sm:$0xff] (!%p158_p3)   ;;  %v1432_v4 = vld [vmem:[%s1835_s1 + $0x8] sm:$0xff] (!%p158_p3)   ;;  %v1434_v6 = vld [vmem:[%s1835_s1 + $0x10] sm:$0xff] (!%p158_p3)   ;;  %vm988_vm1 = vcmask (!%p158_p3), 1041408   ;;  %vm1117_vm2 = vcmask (!%p158_p3), 1041409  }
   0x8   : > { %397 = vmatpush1.bf16.msra.mxu0 (!%p158_p3), %v1429_v0  ;;  %582 = vmatpush1.bf16.msra.mxu1 (!%p158_p3), %v1430_v2  ;;  %v1435_v7 = vld [vmem:[%s1835_s1 + $0x78] sm:$0xff] (!%p158_p3)   ;;  %v1437_v9 = vld [vmem:[%s1835_s1 + $0x80] sm:$0xff] (!%p158_p3)   ;;  %v1439_v11 = vld [vmem:[%s1835_s1 + $0x88] sm:$0xff] (!%p158_p3)   ;;  %vm1119_vm3 = vcmask (!%p158_p3), 1042434   ;;  %vm1121_vm4 = vcmask (!%p158_p3), 1043459  }
   0x9   : > { %398 = vmatprep.subr.bf16.mxu0 (!%p158_p3), %v1507_v1  ;;  %583 = vmatprep.subr.bf16.mxu1 (!%p158_p3), %v1507_v1  ;;  %v1436_v8 = vld [vmem:[%s1835_s1 + $0x18] sm:$0xff] (!%p158_p3)   ;;  %v1438_v10 = vld [vmem:[%s1835_s1 + $0x20] sm:$0xff] (!%p158_p3)   ;;  %v1440_v12 = vld [vmem:[%s1835_s1 + $0x28] sm:$0xff] (!%p158_p3)  }
   0xa   : > { %v1441_v13 = vld [vmem:[%s1835_s1 + $0x90] sm:$0xff] (!%p158_p3)   ;;  %v1443_v20 = vld [vmem:[%s1835_s1 + $0x98] sm:$0xff] (!%p158_p3)   ;;  %v1445_v22 = vld [vmem:[%s1835_s1 + $0xa0] sm:$0xff] (!%p158_p3)  }
   0xb   : > { %v1442_v14 = vld [vmem:[%s1835_s1 + $0x30] sm:$0xff] (!%p158_p3)   ;;  %v1444_v21 = vld [vmem:[%s1835_s1 + $0x38] sm:$0xff] (!%p158_p3)   ;;  %v1446_v23 = vld [vmem:[%s1835_s1 + $0x40] sm:$0xff] (!%p158_p3)  }
   0xc   : > { %399 = vmatpush1.bf16.msra.mxu0 (!%p158_p3), %v1431_v3  ;;  %584 = vmatpush1.bf16.msra.mxu1 (!%p158_p3), %v1432_v4  ;;  %v1447_v24 = vld [vmem:[%s1835_s1 + $0xa8] sm:$0xff] (!%p158_p3)   ;;  %v1449_v26 = vld [vmem:[%s1835_s1 + $0xb0] sm:$0xff] (!%p158_p3)   ;;  %v1451_v28 = vld [vmem:[%s1835_s1 + $0xb8] sm:$0xff] (!%p158_p3)  }
   0xd   : > { %400 = vmatprep.subr.bf16.mxu0 (!%p158_p3), %v1507_v1  ;;  %585 = vmatprep.subr.bf16.mxu1 (!%p158_p3), %v1507_v1  ;;  %v1448_v25 = vld [vmem:[%s1835_s1 + $0x48] sm:$0xff] (!%p158_p3)   ;;  %v1450_v27 = vld [vmem:[%s1835_s1 + $0x50] sm:$0xff] (!%p158_p3)   ;;  %v1452_v29 = vld [vmem:[%s1835_s1 + $0x58] sm:$0xff] (!%p158_p3)  }
   0xe   : > { %s1843_s12 = smov (!%p189_p4, %s1497_s12), 1  ;;  %v1457_v34 = vld [vmem:[%s1835_s1 + $0xc0] sm:$0xff]   ;;  %v1458_v37 = vld [vmem:[%s1835_s1 + $0xc8] sm:$0xff]   ;;  %v1459_v41 = vld [vmem:[%s1835_s1 + $0xd0] sm:$0xff]  }
   0xf   : > { %s1402_s9 = smul.u32 80, %s1843_s12  ;;  %v1460_v45 = vld [vmem:[%s1835_s1 + $0xd8] sm:$0xff]   ;;  %v1461_v49 = vld [vmem:[%s1835_s1 + $0xe0] sm:$0xff]   ;;  %v1466_v53 = vld [vmem:[%s1835_s1 + $0xe8] sm:$0xff]   ;;  %s1377_s26 = sshll.u32 %s1843_s12, 4 }
  0x10   : > { %401 = vmatpush1.bf16.msra.mxu0 %v1433_v5  ;;  %586 = vmatpush1.bf16.msra.mxu1 %v1434_v6  ;;  %v1467_v55 = vld [vmem:[%s1835_s1 + $0xf0] sm:$0xff]   ;;  %v1472_v57 = vld [vmem:[%s1835_s1 + $0xf8] sm:$0xff]   ;;  %v1473_v58 = vld [vmem:[%s1835_s1 + $0x100] sm:$0xff]   ;;  %s1793_s29 = scalar_lea.vmem %s1837_s3, %s1377_s26 }
  0x11   : > { %402 = vmatprep.subr.bf16.mxu0 %v1507_v1  ;;  %587 = vmatprep.subr.bf16.mxu1 %v1507_v1  ;;  %s1605_s20 = scalar_lea.vmem %s1834_s0, %s1402_s9  ;;  %v1478_v59 = vld [vmem:[%s1835_s1 + $0x108] sm:$0xff]   ;;  %v1479_v60 = vld [vmem:[%s1835_s1 + $0x110] sm:$0xff]   ;;  %v1480_v61 = vld [vmem:[%s1835_s1 + $0x118] sm:$0xff]  }
  0x12   : > { %v1238_v15 = vld [vmem:[%s1605_s20 + $0x8] sm:$0xff]  ;;  %v1239_v16 = vld [vmem:[%s1605_s20 + $0x10] sm:$0xff]  ;;  %v209_v17 = vld [vmem:[%s1605_s20] sm:$0xff] }
  0x13   : > { %v1271_v18 = vcombine.high %v1238_v15, %v1239_v16  ;;  %v1295_v19 = vcombine.high %v209_v17, %v1238_v15  ;;  %v1270_v30 = vcombine.low %v1238_v15, %v1239_v16  ;;  %v1240_v31 = vld [vmem:[%s1605_s20 + $0x18] sm:$0xff]  ;;  %v1241_v32 = vld [vmem:[%s1605_s20 + $0x20] sm:$0xff]  ;;  %v1294_v33 = vcombine.low %v209_v17, %v1238_v15  ;;  %v1242_v39 = vld [vmem:[%s1605_s20 + $0x28] sm:$0xff] }
  0x14   : > { %403 = vmatpush1.bf16.msra.mxu0 %v1435_v7  ;;  %588 = vmatpush1.bf16.msra.mxu1 %v1436_v8  ;;  %v1273_v35 = vcombine.high %v1240_v31, %v1241_v32  ;;  %v1667_v36 = vcombine.high %v1239_v16, %v1240_v31  ;;  %v1272_v38 = vcombine.low %v1240_v31, %v1241_v32  ;;  %v1243_v40 = vld [vmem:[%s1605_s20 + $0x30] sm:$0xff]  ;;  %v1244_v47 = vld [vmem:[%s1605_s20 + $0x38] sm:$0xff]  ;;  %v1699_v48 = vld [vmem:[%s1605_s20 + $0x40] sm:$0xff] }
  0x15   : > { %404 = vmatprep.subr.bf16.mxu0 %v1507_v1  ;;  %589 = vmatprep.subr.bf16.mxu1 %v1507_v1  ;;  %v1682_v42 = vcombine.low %v1239_v16, %v1240_v31  ;;  %v1275_v43 = vcombine.high %v1242_v39, %v1243_v40  ;;  %v1686_v44 = vcombine.high %v1241_v32, %v1242_v39  ;;  %v1325_v62 = vld [vmem:[%s1605_s20 + $0x48] sm:$0xff] }
  0x16   : > { %1290 = vmatprep.mubr.msk.bf16.mxu0 %vm383_vm0, %v1271_v18  ;;  %1314 = vmatprep.mubr.msk.bf16.mxu1 %vm383_vm0, %v1295_v19  ;;  %v1274_v46 = vcombine.low %v1242_v39, %v1243_v40  ;;  %v1298_v50 = vcombine.low %v1241_v32, %v1242_v39  ;;  %v1277_v51 = vcombine.high %v1244_v47, %v1699_v48 }
  0x17   : > { %v1301_v52 = vcombine.high %v1243_v40, %v1244_v47  ;;  %v1276_v54 = vcombine.low %v1244_v47, %v1699_v48  ;;  %v1300_v56 = vcombine.low %v1243_v40, %v1244_v47  ;;  %v1357_v63 = vcombine.high %v1699_v48, %v1325_v62 }
  0x18   : > { %405 = vmatpush1.bf16.msra.mxu0 %v1437_v9  ;;  %590 = vmatpush1.bf16.msra.mxu1 %v1438_v10  ;;  %v1356_v0 = vcombine.low %v1699_v48, %v1325_v62 }
  0x19   : > { %406 = vmatprep.subr.bf16.mxu0 %v1507_v1  ;;  %591 = vmatprep.subr.bf16.mxu1 %v1507_v1 }
  0x1c   : > { %407 = vmatpush1.bf16.msra.mxu0 %v1439_v11  ;;  %592 = vmatpush1.bf16.msra.mxu1 %v1440_v12 }
  0x1d   : > { %408 = vmatprep.subr.bf16.mxu0 %v1507_v1  ;;  %593 = vmatprep.subr.bf16.mxu1 %v1507_v1 }
  0x20   : > { %409 = vmatpush1.bf16.msra.mxu0 %v1441_v13  ;;  %594 = vmatpush1.bf16.msra.mxu1 %v1442_v14 }
  0x21   : > { %410 = vmatprep.subr.bf16.mxu0 %v1507_v1  ;;  %595 = vmatprep.subr.bf16.mxu1 %v1507_v1 }
  0x24   : > { %411 = vmatpush1.bf16.msra.mxu0 %v1443_v20  ;;  %596 = vmatpush1.bf16.msra.mxu1 %v1444_v21 }
  0x25   : > { %412 = vmatprep.subr.bf16.mxu0 %v1507_v1  ;;  %597 = vmatprep.subr.bf16.mxu1 %v1507_v1 }
  0x28   : > { %413 = vmatpush1.bf16.msra.mxu0 %v1445_v22  ;;  %598 = vmatpush1.bf16.msra.mxu1 %v1446_v23 }
  0x29   : > { %414 = vmatprep.subr.bf16.mxu0 %v1507_v1  ;;  %599 = vmatprep.subr.bf16.mxu1 %v1507_v1 }
  0x2c   : > { %415 = vmatpush1.bf16.msra.mxu0 %v1447_v24  ;;  %600 = vmatpush1.bf16.msra.mxu1 %v1448_v25 }
  0x2d   : > { %416 = vmatprep.subr.bf16.mxu0 %v1507_v1  ;;  %601 = vmatprep.subr.bf16.mxu1 %v1507_v1 }
  0x30   : > { %417 = vmatpush1.bf16.msra.mxu0 %v1449_v26  ;;  %602 = vmatpush1.bf16.msra.mxu1 %v1450_v27 }
  0x31   : > { %418 = vmatprep.subr.bf16.mxu0 %v1507_v1  ;;  %603 = vmatprep.subr.bf16.mxu1 %v1507_v1 }
  0x34   : > { %419 = vmatpush1.bf16.msra.mxu0 %v1451_v28  ;;  %604 = vmatpush1.bf16.msra.mxu1 %v1452_v29 }
  0x35   : > { %800 = vmatprep.subr.bf16.mxu0 %v1507_v1  ;;  %1378 = vmatprep.subr.bf16.mxu1 %v1507_v1 }
  0x37   : > { %429 = vmatmul.mubr.bf16.vlgmr.msra.gmra.mrb[0].mxu0 %v1270_v30  ;;  %614 = vmatmul.mubr.bf16.vlgmr.msra.gmra.mrb[0].mxu1 %v1294_v33 }
  0x38   : > { %801 = vmatpush1.bf16.msra.mxu0 %v1457_v34  ;;  %1390 = vmatpush1.bf16.msra.mxu1 %v1457_v34 }
  0x39   : > { %802 = vmatprep.subr.bf16.mxu0 %v1507_v1  ;;  %1379 = vmatprep.subr.bf16.mxu1 %v1507_v1 }
  0x3a   : > { %1291 = vmatprep.mubr.msk.bf16.mxu0 %vm383_vm0, %v1273_v35  ;;  %1315 = vmatprep.mubr.msk.bf16.mxu1 %vm383_vm0, %v1667_v36 }
  0x3c   : > { %803 = vmatpush1.bf16.msra.mxu0 %v1458_v37  ;;  %1391 = vmatpush1.bf16.msra.mxu1 %v1458_v37 }
  0x3d   : > { %804 = vmatprep.subr.bf16.mxu0 %v1507_v1  ;;  %1380 = vmatprep.subr.bf16.mxu1 %v1507_v1 }
  0x3f   : > { %437 = vmatmul.mubr.bf16.gmra.mrb[4].mxu0 %v1272_v38  ;;  %622 = vmatmul.mubr.bf16.gmra.mrb[4].mxu1 %v1682_v42 }
  0x40   : > { %805 = vmatpush1.bf16.msra.mxu0 %v1459_v41  ;;  %1392 = vmatpush1.bf16.msra.mxu1 %v1459_v41  ;;  %v1508_v41 = vmov 1983009808  }
  0x41   : > { %806 = vmatprep.subr.bf16.mxu0 %v1507_v1  ;;  %1381 = vmatprep.subr.bf16.mxu1 %v1507_v1 }
  0x42   : > { %1292 = vmatprep.mubr.msk.bf16.mxu0 %vm383_vm0, %v1275_v43  ;;  %1316 = vmatprep.mubr.msk.bf16.mxu1 %vm383_vm0, %v1686_v44  ;;  %v908_v43 = vlaneseq }
  0x44   : > { %807 = vmatpush1.bf16.msra.mxu0 %v1460_v45  ;;  %1393 = vmatpush1.bf16.msra.mxu1 %v1460_v45  ;;  %v1758_v45 = vld [vmem:[%s1836_s2] ss:$0 sm:$0xff] }
  0x45   : > { %808 = vmatprep.subr.bf16.mxu0 %v1507_v1  ;;  %1382 = vmatprep.subr.bf16.mxu1 %v1507_v1 }
  0x47   : > { %445 = vmatmul.mubr.bf16.gmra.mrb[8].mxu0 %v1274_v46  ;;  %630 = vmatmul.mubr.bf16.gmra.mrb[8].mxu1 %v1298_v50 }
  0x48   : > { %809 = vmatpush1.bf16.msra.mxu0 %v1461_v49  ;;  %1394 = vmatpush1.bf16.msra.mxu1 %v1461_v49 }
  0x49   : > { %810 = vmatprep.subr.bf16.mxu0 %v1507_v1  ;;  %1383 = vmatprep.subr.bf16.mxu1 %v1507_v1 }
  0x4a   : > { %1293 = vmatprep.mubr.msk.bf16.mxu0 %vm383_vm0, %v1277_v51  ;;  %1317 = vmatprep.mubr.msk.bf16.mxu1 %vm383_vm0, %v1301_v52 }
  0x4c   : > { %811 = vmatpush1.bf16.msra.mxu0 %v1466_v53  ;;  %1395 = vmatpush1.bf16.msra.mxu1 %v1466_v53 }
  0x4d   : > { %812 = vmatprep.subr.bf16.mxu0 %v1507_v1  ;;  %1384 = vmatprep.subr.bf16.mxu1 %v1507_v1 }
  0x4f   : > { %453 = vmatmul.mubr.bf16.gmra.mrb[12].mxu0 %v1276_v54  ;;  %638 = vmatmul.mubr.bf16.gmra.mrb[12].mxu1 %v1300_v56 }
  0x50   : > { %813 = vmatpush1.bf16.msra.mxu0 %v1467_v55  ;;  %1396 = vmatpush1.bf16.msra.mxu1 %v1467_v55  ;;  %v909_v55 = vshrl.u32 %v908_v43, 7 }
  0x51   : > { %814 = vmatprep.subr.bf16.mxu0 %v1507_v1  ;;  %1385 = vmatprep.subr.bf16.mxu1 %v1507_v1 }
  0x52   : > { %1370 = vmatprep.mubr.msk.bf16.mxu0 %vm383_vm0, %v1667_v36  ;;  %1372 = vmatprep.mubr.msk.bf16.mxu1 %vm383_vm0, %v1301_v52 }
  0x54   : > { %815 = vmatpush1.bf16.msra.mxu0 %v1472_v57  ;;  %1397 = vmatpush1.bf16.msra.mxu1 %v1472_v57 }
  0x55   : > { %816 = vmatprep.subr.bf16.mxu0 %v1507_v1  ;;  %1386 = vmatprep.subr.bf16.mxu1 %v1507_v1 }
  0x58   : > { %817 = vmatpush1.bf16.msra.mxu0 %v1473_v58  ;;  %1398 = vmatpush1.bf16.msra.mxu1 %v1473_v58 }
  0x59   : > { %818 = vmatprep.subr.bf16.mxu0 %v1507_v1  ;;  %1387 = vmatprep.subr.bf16.mxu1 %v1507_v1 }
  0x5c   : > { %819 = vmatpush1.bf16.msra.mxu0 %v1478_v59  ;;  %1399 = vmatpush1.bf16.msra.mxu1 %v1478_v59 }
  0x5d   : > { %820 = vmatprep.subr.bf16.mxu0 %v1507_v1  ;;  %1388 = vmatprep.subr.bf16.mxu1 %v1507_v1 }
  0x60   : > { %821 = vmatpush1.bf16.msra.mxu0 %v1479_v60  ;;  %1400 = vmatpush1.bf16.msra.mxu1 %v1479_v60 }
  0x61   : > { %822 = vmatprep.subr.bf16.mxu0 %v1507_v1  ;;  %1389 = vmatprep.subr.bf16.mxu1 %v1507_v1 }
  0x64   : > { %823 = vmatpush1.bf16.msra.mxu0 %v1480_v61  ;;  %1401 = vmatpush1.bf16.msra.mxu1 %v1480_v61 }
  0x67   : > { %833 = vmatmul.mubr.bf16.vlgmr.msra.gmra.mrb[16].mxu0 %v1682_v42  ;;  %849 = vmatmul.mubr.bf16.vlgmr.msra.gmra.mrb[16].mxu1 %v1300_v56  ;;  %v906_v42 = vunpack.c.l.s4 %v1508_v41 }
  0x68   : > { %1371 = vmatprep.mubr.msk.bf16.mxu0 %vm383_vm0, %v1686_v44  ;;  %1373 = vmatprep.mubr.msk.bf16.mxu1 %vm383_vm0, %v1357_v63 }
  0x69   : > { %v907_v54 = vunpack.c.0.s8 %v906_v42 }
  0x6f   : > { %841 = vmatmul.mubr.bf16.gmra.mrb[20].mxu0 %v1298_v50  ;;  %857 = vmatmul.mubr.bf16.gmra.mrb[20].mxu1 %v1356_v0 }
 0x10a   : > { %v430_v2 = vpop.f32.mrb[0].mxu0  ;;  %v615_v3 = vpop.f32.mrb[0].mxu1 }
 0x10b   : > { %v432_v1 = vpop.f32.mrb[1].mxu0  ;;  %v616_v4 = vadd.f32 %v615_v3, %v430_v2  ;;  %v617_v5 = vpop.f32.mrb[1].mxu1  ;;  %v1764_v2 = vsub.s32 %v907_v54, %v909_v55 }
 0x10c   : > { %v433_v6 = vpop.f32.mrb[2].mxu0  ;;  %v618_v7 = vpop.f32.mrb[2].mxu1 }
 0x10d   : > { %v435_v8 = vpop.f32.mrb[3].mxu0  ;;  %v619_v9 = vadd.f32 %v618_v7, %v433_v6  ;;  %v620_v10 = vpop.f32.mrb[3].mxu1 }
 0x112   : > { %v438_v11 = vpop.f32.mrb[4].mxu0  ;;  %v623_v12 = vpop.f32.mrb[4].mxu1 }
 0x113   : > { %v440_v13 = vpop.f32.mrb[5].mxu0  ;;  %v624_v14 = vadd.f32 %v623_v12, %v438_v11  ;;  %v625_v15 = vpop.f32.mrb[5].mxu1 }
 0x114   : > { %v441_v16 = vpop.f32.mrb[6].mxu0  ;;  %v626_v17 = vpop.f32.mrb[6].mxu1 }
 0x115   : > { %v443_v18 = vpop.f32.mrb[7].mxu0  ;;  %v627_v19 = vadd.f32 %v626_v17, %v441_v16  ;;  %v628_v20 = vpop.f32.mrb[7].mxu1 }
 0x11a   : > { %v446_v21 = vpop.f32.mrb[8].mxu0  ;;  %v631_v22 = vpop.f32.mrb[8].mxu1 }
 0x11b   : > { %v448_v23 = vpop.f32.mrb[9].mxu0  ;;  %v632_v24 = vadd.f32 %v631_v22, %v446_v21  ;;  %v633_v25 = vpop.f32.mrb[9].mxu1 }
 0x11c   : > { %v449_v26 = vpop.f32.mrb[10].mxu0  ;;  %v634_v27 = vpop.f32.mrb[10].mxu1 }
 0x11d   : > { %v451_v28 = vpop.f32.mrb[11].mxu0  ;;  %v635_v29 = vadd.f32 %v634_v27, %v449_v26  ;;  %v636_v30 = vpop.f32.mrb[11].mxu1 }
 0x122   : > { %v454_v31 = vpop.f32.mrb[12].mxu0  ;;  %v639_v32 = vpop.f32.mrb[12].mxu1 }
 0x123   : > { %v456_v33 = vpop.f32.mrb[13].mxu0  ;;  %v640_v34 = vadd.f32 %v639_v32, %v454_v31  ;;  %v641_v35 = vpop.f32.mrb[13].mxu1 }
 0x124   : > { %v457_v36 = vpop.f32.mrb[14].mxu0  ;;  %v642_v37 = vpop.f32.mrb[14].mxu1 }
 0x125   : > { %v459_v38 = vpop.f32.mrb[15].mxu0  ;;  %v643_v39 = vadd.f32 %v642_v37, %v457_v36  ;;  %v644_v40 = vpop.f32.mrb[15].mxu1 }
 0x13a   : > { %v834_v44 = vpop.f32.mrb[16].mxu0  ;;  %v850_v47 = vpop.f32.mrb[16].mxu1 }
 0x13b   : > { %v865_v46 = vadd.f32 %v834_v44, %v616_v4  ;;  %v836_v48 = vpop.f32.mrb[17].mxu0  ;;  %v869_v49 = vadd.f32 %v850_v47, %v632_v24  ;;  %v852_v50 = vpop.f32.mrb[17].mxu1 }
 0x13c   : > { %v837_v51 = vpop.f32.mrb[18].mxu0  ;;  %v853_v56 = vpop.f32.mrb[18].mxu1 }
 0x13d   : > { %v880_v52 = vadd.f32 %v1758_v45, %v865_v46  ;;  %v866_v53 = vadd.f32 %v837_v51, %v619_v9  ;;  %v839_v57 = vpop.f32.mrb[19].mxu0  ;;  %v884_v58 = vadd.f32 %v1758_v45, %v869_v49  ;;  %v870_v59 = vadd.f32 %v853_v56, %v635_v29  ;;  %v855_v60 = vpop.f32.mrb[19].mxu1 }
 0x13f   : > { %v881_v61 = vadd.f32 %v1758_v45, %v866_v53  ;;  %v885_v62 = vadd.f32 %v1758_v45, %v870_v59  ;;  %v888_v63 = vmax.f32 %v880_v52, 0.0  ;;  %v892_v3 = vmax.f32 %v884_v58, 0.0 }
 0x141   : > { %v889_v0 = vmax.f32 %v881_v61, 0.0  ;;  %v893_v1 = vmax.f32 %v885_v62, 0.0 }
 0x142   : > { %v842_v4 = vpop.f32.mrb[20].mxu0  ;;  %v858_v7 = vpop.f32.mrb[20].mxu1 }
 0x143   : > { %v896_v5 = vmax.f32 %v888_v63, %v889_v0  ;;  %v867_v6 = vadd.f32 %v842_v4, %v624_v14  ;;  %v844_v8 = vpop.f32.mrb[21].mxu0  ;;  %v898_v9 = vmax.f32 %v892_v3, %v893_v1  ;;  %v871_v10 = vadd.f32 %v858_v7, %v640_v34  ;;  %v860_v11 = vpop.f32.mrb[21].mxu1 }
 0x144   : > { %v845_v12 = vpop.f32.mrb[22].mxu0  ;;  %v861_v17 = vpop.f32.mrb[22].mxu1 }
 0x145   : > { %v904_v13 = vcombine.high %v896_v5, %v896_v5  ;;  %v911_v15 = vrot.slane %v896_v5, %v1764_v2  ;;  %v1767_v16 = vadd.f32 %v845_v12, %v627_v19  ;;  %v847_v18 = vpop.f32.mrb[23].mxu0  ;;  %v938_v20 = vcombine.high %v898_v9, %v898_v9  ;;  %v863_v14 = vpop.f32.mrb[23].mxu1 }
 0x146   : > { %v945_v21 = vrot.slane %v898_v9, %v1764_v2  ;;  %v1770_v22 = vadd.f32 %v861_v17, %v643_v39  ;;  %v1775_v26 = vadd.f32 %v1758_v45, %v867_v6  ;;  %v886_v1 = vadd.f32 %v1758_v45, %v871_v10 }
 0x147   : > { %v918_v23 = vrot.slane %v904_v13, %v1764_v2  ;;  %v919_v24 = vcombine.high %v911_v15, %v911_v15  ;;  %v989_v25 = vsel %vm988_vm1, %v911_v15, -inf  ;;  %v952_v19 = vrot.slane %v938_v20, %v1764_v2 }
 0x148   : > { %v990_v27 = vrot.slane %v989_v25, 4  ;;  %v953_v28 = vcombine.high %v945_v21, %v945_v21  ;;  %v1045_v29 = vsel %vm988_vm1, %v945_v21, -inf  ;;  %v890_v12 = vmax.f32 %v1775_v26, 0.0 }
 0x149   : > { %v920_v30 = vcombine.high %v918_v23, %v918_v23  ;;  %v996_v31 = vsel %vm988_vm1, %v919_v24, -inf  ;;  %v1003_v32 = vsel %vm988_vm1, %v918_v23, -inf  ;;  %v1046_v33 = vrot.slane %v1045_v29, 4 }
 0x14a   : > { %v991_v34 = vmax.f32 %v989_v25, %v990_v27  ;;  %v997_v35 = vrot.slane %v996_v31, 4  ;;  %v1004_v36 = vrot.slane %v1003_v32, 4  ;;  %v954_v37 = vcombine.high %v952_v19, %v952_v19 }
 0x14b   : > { %v1010_v38 = vsel %vm988_vm1, %v920_v30, -inf  ;;  %v1047_v39 = vmax.f32 %v1045_v29, %v1046_v33  ;;  %v1052_v40 = vsel %vm988_vm1, %v953_v28, -inf  ;;  %v1059_v41 = vsel %vm988_vm1, %v952_v19, -inf }
 0x14c   : > { %v992_v42 = vrot.slane %v991_v34, 2  ;;  %v998_v43 = vmax.f32 %v996_v31, %v997_v35  ;;  %v1005_v44 = vmax.f32 %v1003_v32, %v1004_v36  ;;  %v1011_v46 = vrot.slane %v1010_v38, 4 }
 0x14d   : > { %v1048_v47 = vrot.slane %v1047_v39, 2  ;;  %v1053_v48 = vrot.slane %v1052_v40, 4  ;;  %v1060_v49 = vrot.slane %v1059_v41, 4  ;;  %v1066_v50 = vsel %vm988_vm1, %v954_v37, -inf }
 0x14e   : > { %v993_v51 = vmax.f32 %v991_v34, %v992_v42  ;;  %v999_v52 = vrot.slane %v998_v43, 2  ;;  %v1006_v53 = vrot.slane %v1005_v44, 2  ;;  %v1012_v54 = vmax.f32 %v1010_v38, %v1011_v46 }
 0x14f   : > { %v1049_v55 = vmax.f32 %v1047_v39, %v1048_v47  ;;  %v1054_v56 = vmax.f32 %v1052_v40, %v1053_v48  ;;  %v1061_v57 = vmax.f32 %v1059_v41, %v1060_v49  ;;  %v1067_v58 = vrot.slane %v1066_v50, 4 }
 0x150   : > { %v994_v59 = vrot.slane %v993_v51, 1  ;;  %v1000_v60 = vmax.f32 %v998_v43, %v999_v52  ;;  %v1007_v61 = vmax.f32 %v1005_v44, %v1006_v53  ;;  %v1013_v62 = vrot.slane %v1012_v54, 2 }
 0x151   : > { %v1055_v63 = vrot.slane %v1054_v56, 2  ;;  %v1062_v0 = vrot.slane %v1061_v57, 2  ;;  %v1068_v3 = vmax.f32 %v1066_v50, %v1067_v58  ;;  %v1050_v7 = vrot.slane %v1049_v55, 1 }
 0x152   : > { %v1001_v4 = vrot.slane %v1000_v60, 1  ;;  %v1008_v5 = vrot.slane %v1007_v61, 1  ;;  %v1014_v6 = vmax.f32 %v1012_v54, %v1013_v62  ;;  %v995_v13 = vmax.f32 %v993_v51, %v994_v59 }
 0x153   : > { %v1056_v8 = vmax.f32 %v1054_v56, %v1055_v63  ;;  %v1063_v9 = vmax.f32 %v1061_v57, %v1062_v0  ;;  %v1069_v11 = vrot.slane %v1068_v3, 2  ;;  %v883_v10 = vadd.f32 %v1758_v45, %v1767_v16 }
 0x154   : > { %v1002_v15 = vmax.f32 %v1000_v60, %v1001_v4  ;;  %v1009_v17 = vmax.f32 %v1007_v61, %v1008_v5  ;;  %v1015_v18 = vrot.slane %v1014_v6, 1  ;;  %v1051_v25 = vmax.f32 %v1049_v55, %v1050_v7 }
 0x155   : > { %v1057_v20 = vrot.slane %v1056_v8, 1  ;;  %v1064_v21 = vrot.slane %v1063_v9, 1  ;;  %v1070_v14 = vmax.f32 %v1068_v3, %v1069_v11  ;;  %v887_v26 = vadd.f32 %v1758_v45, %v1770_v22 }
 0x156   : > { %v1016_v23 = vmax.f32 %v1014_v6, %v1015_v18  ;;  %v1118_v24 = vsel %vm1117_vm2, %v1002_v15, %v995_v13  ;;  %v894_v30 = vmax.f32 %v886_v1, 0.0  ;;  %v891_v31 = vmax.f32 %v883_v10, 0.0 }
 0x157   : > { %v1120_v27 = vsel %vm1119_vm3, %v1009_v17, %v1118_v24  ;;  %v1058_v19 = vmax.f32 %v1056_v8, %v1057_v20  ;;  %v1065_v28 = vmax.f32 %v1063_v9, %v1064_v21  ;;  %v1071_v29 = vrot.slane %v1070_v14, 1 }
 0x158   : > { %v1122_v16 = vsel %vm1121_vm4, %v1016_v23, %v1120_v27  ;;  %v895_v32 = vmax.f32 %v887_v26, 0.0  ;;  %v897_v36 = vmax.f32 %v890_v12, %v891_v31 }
 0x159   : > { %1136 = vst [vmem:[%s1793_s29] sm:$0xf] %v1122_v16  ;;  %v1072_v33 = vmax.f32 %v1070_v14, %v1071_v29  ;;  %v1126_v34 = vsel %vm1117_vm2, %v1058_v19, %v1051_v25 }
 0x15a   : > { %v1127_v35 = vsel %vm1119_vm3, %v1065_v28, %v1126_v34  ;;  %v899_v37 = vmax.f32 %v894_v30, %v895_v32  ;;  %v921_v22 = vcombine.high %v897_v36, %v897_v36  ;;  %v928_v38 = vrot.slane %v897_v36, %v1764_v2 }
 0x15b   : > { %v1128_v45 = vsel %vm1121_vm4, %v1072_v33, %v1127_v35 }
 0x15c   : > { %1138 = vst [vmem:[%s1793_s29 + $0x8] sm:$0xf] %v1128_v45  ;;  %v955_v39 = vcombine.high %v899_v37, %v899_v37  ;;  %v962_v40 = vrot.slane %v899_v37, %v1764_v2  ;;  %v935_v41 = vrot.slane %v921_v22, %v1764_v2  ;;  %v936_v42 = vcombine.high %v928_v38, %v928_v38 }
 0x15d   : > { %v1017_v43 = vsel %vm988_vm1, %v928_v38, -inf }
 0x15e   : > { %v969_v44 = vrot.slane %v955_v39, %v1764_v2  ;;  %v1018_v46 = vrot.slane %v1017_v43, 4  ;;  %v970_v47 = vcombine.high %v962_v40, %v962_v40  ;;  %v1073_v48 = vsel %vm988_vm1, %v962_v40, -inf }
 0x15f   : > { %v937_v49 = vcombine.high %v935_v41, %v935_v41  ;;  %v1024_v50 = vsel %vm988_vm1, %v936_v42, -inf  ;;  %v1031_v51 = vsel %vm988_vm1, %v935_v41, -inf  ;;  %v1074_v56 = vrot.slane %v1073_v48, 4 }
 0x160   : > { %v971_v52 = vcombine.high %v969_v44, %v969_v44  ;;  %v1019_v53 = vmax.f32 %v1017_v43, %v1018_v46  ;;  %v1025_v54 = vrot.slane %v1024_v50, 4  ;;  %v1032_v55 = vrot.slane %v1031_v51, 4 }
 0x161   : > { %v1038_v57 = vsel %vm988_vm1, %v937_v49, -inf  ;;  %v1080_v58 = vsel %vm988_vm1, %v970_v47, -inf  ;;  %v1087_v2 = vsel %vm988_vm1, %v969_v44, -inf  ;;  %v1075_v0 = vmax.f32 %v1073_v48, %v1074_v56 }
 0x162   : > { %v1094_v59 = vsel %vm988_vm1, %v971_v52, -inf  ;;  %v1020_v60 = vrot.slane %v1019_v53, 2  ;;  %v1026_v61 = vmax.f32 %v1024_v50, %v1025_v54  ;;  %v1033_v62 = vmax.f32 %v1031_v51, %v1032_v55 }
 0x163   : > { %v1039_v63 = vrot.slane %v1038_v57, 4  ;;  %v1081_v3 = vrot.slane %v1080_v58, 4  ;;  %v1088_v1 = vrot.slane %v1087_v2, 4  ;;  %v1095_v4 = vrot.slane %v1094_v59, 4 }
 0x164   : > { %v1021_v5 = vmax.f32 %v1019_v53, %v1020_v60  ;;  %v1027_v6 = vrot.slane %v1026_v61, 2  ;;  %v1034_v7 = vrot.slane %v1033_v62, 2  ;;  %v1076_v9 = vrot.slane %v1075_v0, 2 }
 0x165   : > { %v1040_v8 = vmax.f32 %v1038_v57, %v1039_v63  ;;  %v1082_v11 = vmax.f32 %v1080_v58, %v1081_v3  ;;  %v1089_v12 = vmax.f32 %v1087_v2, %v1088_v1  ;;  %v1096_v13 = vmax.f32 %v1094_v59, %v1095_v4 }
 0x166   : > { %v1022_v15 = vrot.slane %v1021_v5, 1  ;;  %v1028_v17 = vmax.f32 %v1026_v61, %v1027_v6  ;;  %v1035_v18 = vmax.f32 %v1033_v62, %v1034_v7  ;;  %v1077_v21 = vmax.f32 %v1075_v0, %v1076_v9 }
 0x167   : > { %v1041_v20 = vrot.slane %v1040_v8, 2  ;;  %v1083_v14 = vrot.slane %v1082_v11, 2  ;;  %v1090_v10 = vrot.slane %v1089_v12, 2  ;;  %v1097_v23 = vrot.slane %v1096_v13, 2 }
 0x168   : > { %v1029_v24 = vrot.slane %v1028_v17, 1  ;;  %v1036_v25 = vrot.slane %v1035_v18, 1  ;;  %v1078_v27 = vrot.slane %v1077_v21, 1  ;;  %v1023_v16 = vmax.f32 %v1021_v5, %v1022_v15 }
 0x169   : > { %v1042_v26 = vmax.f32 %v1040_v8, %v1041_v20  ;;  %v1084_v19 = vmax.f32 %v1082_v11, %v1083_v14  ;;  %v1091_v28 = vmax.f32 %v1089_v12, %v1090_v10  ;;  %v1098_v29 = vmax.f32 %v1096_v13, %v1097_v23 }
 0x16a   : > { %v1030_v30 = vmax.f32 %v1028_v17, %v1029_v24  ;;  %v1037_v31 = vmax.f32 %v1035_v18, %v1036_v25  ;;  %v1079_v45 = vmax.f32 %v1077_v21, %v1078_v27 }
 0x16b   : > { %v1043_v32 = vrot.slane %v1042_v26, 1  ;;  %v1085_v33 = vrot.slane %v1084_v19, 1  ;;  %v1092_v34 = vrot.slane %v1091_v28, 1  ;;  %v1099_v35 = vrot.slane %v1098_v29, 1 }
 0x16c   : > { %v1123_v37 = vsel %vm1117_vm2, %v1030_v30, %v1023_v16 }
 0x16d   : > { %v1044_v36 = vmax.f32 %v1042_v26, %v1043_v32  ;;  %v1124_v22 = vsel %vm1119_vm3, %v1037_v31, %v1123_v37  ;;  %v1086_v38 = vmax.f32 %v1084_v19, %v1085_v33  ;;  %v1093_v39 = vmax.f32 %v1091_v28, %v1092_v34 }
 0x16e   : > { %v1100_v40 = vmax.f32 %v1098_v29, %v1099_v35 }
 0x16f   : > { %v1125_v41 = vsel %vm1121_vm4, %v1044_v36, %v1124_v22  ;;  %v1129_v42 = vsel %vm1117_vm2, %v1086_v38, %v1079_v45 }
 0x170   : > { %1137 = vst [vmem:[%s1793_s29 + $0x4] sm:$0xf] %v1125_v41  ;;  %v1130_v43 = vsel %vm1119_vm3, %v1093_v39, %v1129_v42 }
 0x171   : > { %v1131_v44 = vsel %vm1121_vm4, %v1100_v40, %v1130_v43 }
 0x172   : > { %1139 = vst [vmem:[%s1793_s29 + $0xc] sm:$0xf] %v1131_v44 }
 0x173 PF: > { %s13_s14 = sadd.s32 1, %s1505_s14   ;;  %s1838_s12 = smov %s1501_s13 }
 0x174   : > { %p10_p5 = scmp.ge.s32.totalorder %s13_s14, 4   ;;  %s1839_s13 = smov %s1841_s15 }
 0x176   :  { %12 = sbr.rel (!%p10_p5) target bundleno = 2 (0x2), region = 66 }

// kernel: feature_extraction_forward.3
= control target key start
LH: loop header
LB: loop body
LE: loop exit
PB: predicated region body
PF: predicated region fallthrough
CT: control target
= control target key end

     0   :  { %s1775_s12 = smov 0   ;;  %s1777_s13 = smov 0   ;;  %s2093_s0 = inlined_call_operand.vmem [shape: bf16[2,2,10,16,9], index: 0, kind: input, shape index: {}]   ;;  %s2094_s1 = inlined_call_operand.vmem [shape: bf16[3,9,64], index: 1, kind: input, shape index: {}]   ;;  %s2095_s2 = inlined_call_operand.vmem [shape: f32[1,64], index: 2, kind: input, shape index: {}]   ;;  %s2096_s3 = inlined_call_operand.vmem [shape: f32[2,8,8,64], index: 3, kind: output, shape index: {}]  }
   0x1   :  { %s1779_s14 = smov 0   ;;  %s1781_s15 = smov 0  }
   0x2   :  { %s1783_s16 = smov 0  }
   0x3 LB: > { %s22_s17 = sadd.s32 1, %s1743_s14  ;;  %s25_s18 = sadd.s32 1, %s1747_s15  ;;  %s1751_s16 = sphi %s1783_s16, %s13_s16   ;;  %s1747_s15 = sphi %s1781_s15, %s2101_s15   ;;  %s1743_s14 = sphi %s1779_s14, %s2100_s14   ;;  %s1739_s13 = sphi %s1777_s13, %s2099_s13   ;;  %s1735_s12 = sphi %s1775_s12, %s2098_s12  }
   0x4   : > { %p23_p0 = scmp.ge.s32.totalorder %s22_s17, 2  ;;  %p1432_p1 = scmp.ge.s32.totalorder %s1751_s16, 1 }
   0x5   : > { %p157_p2 = scmp.lt.s32.totalorder %s1751_s16, 5 }
   0x6   : > { %s2103_s17 = smov (%p23_p0, %s22_s17), 0  ;;  %s2105_s18 = smov (!%p23_p0, %s25_s18), %s1747_s15 }
   0x7   : > { %p158_p3 = pnand %p1432_p1, %p157_p2  ;;  %p27_p4 = scmp.ge.s32.totalorder %s2105_s18, 2 }
   0x8   : > { %v1686_v0 = vld [vmem:[%s2094_s1 + $0x8] sm:$0x1f] (!%p158_p3)   ;;  %vm317_vm0 = vcmask (!%p158_p3), 1043456   ;;  %vm318_vm1 = vcmask (!%p158_p3), 1044480   ;;  %v1687_v1 = vld [vmem:[%s2094_s1] sm:$0x1f] (!%p158_p3)   ;;  %v871_v43 = vlaneseq (!%p158_p3) }
   0x9   : > { %s2107_s18 = smov (%p27_p4, %s2105_s18), 0  ;;  %161 = sbr.rel (%p158_p3) target bundleno = 361 (0x169), region = 32 }
   0xa   : > { %p189_p5 = scmp.lt.s32.totalorder (!%p158_p3), %s1739_s13, 1  ;;  %p191_p6 = scmp.lt.s32.totalorder (!%p158_p3), %s1735_s12, 1  ;;  %v1753_v2 = vmov (!%p158_p3), 65535   ;;  %v1690_v5 = vld [vmem:[%s2094_s1 + $0x10] sm:$0x1f] (!%p158_p3)   ;;  %vm292_vm2 = vcmask (!%p158_p3), 72704  }
   0xb   : > { %v319_v3 = vsel (!%p158_p3), %vm317_vm0, 4294967295, %v1753_v2  ;;  %v1754_v41 = vmov (!%p158_p3), 1983009808   ;;  %v1877_v45 = vld [vmem:[%s2095_s2] ss:$0 sm:$0xff] (!%p158_p3)  ;;  %v872_v52 = vshrl.u32 (!%p158_p3), %v871_v43, 7 }
   0xc   : > { %v320_v4 = vsel (!%p158_p3), %vm318_vm1, %v319_v3, 0  ;;  %v869_v42 = vunpack.c.l.s4 (!%p158_p3), %v1754_v41  ;;  %vm834_vm3 = vcmask (!%p158_p3), 523264   ;;  %vm1035_vm4 = vcmask (!%p158_p3), 517120   ;;  %s1434_s8 = sshll.u32 (!%p158_p3), %s1735_s12, 2 }
   0xd   : > { %v322_v6 = vand.u32 (!%p158_p3), %v1686_v0, %v320_v4  ;;  %v491_v7 = vand.u32 (!%p158_p3), %v1687_v1, %v320_v4  ;;  %v680_v8 = vand.u32 (!%p158_p3), %v1690_v5, %v320_v4  ;;  %vm1292_vm5 = vcmask (!%p158_p3), 1041409   ;;  %p1928_p7 = scmp.lt.s32.totalorder (!%p158_p3), %s1434_s8, 7 }
   0xe   : > { %v870_v51 = vunpack.c.0.s8 (!%p158_p3), %v869_v42  ;;  %vm1294_vm6 = vcmask (!%p158_p3), 1042434   ;;  %vm1296_vm7 = vcmask (!%p158_p3), 1043459   ;;  %vm1298_vm8 = vcmask (!%p158_p3), 1044484  }
   0xf   : > { %1554 = vmatprep.subr.bf16.mxu1 (!%p158_p3), %v322_v6  ;;  %1572 = vmatprep.subr.bf16.mxu0 (!%p158_p3), %v491_v7  ;;  %vm1300_vm9 = vcmask (!%p158_p3), 1045509   ;;  %vm1302_vm10 = vcmask (!%p158_p3), 1046534   ;;  %vm1304_vm11 = vcmask (!%p158_p3), 1047559  }
  0x10   : > { %s2109_s13 = smov (!%p189_p5, %s1739_s13), 1  ;;  %1555 = vmatpush3.bf16.msra.mxu1 %v322_v6  ;;  %1573 = vmatpush3.bf16.msra.mxu0 %v491_v7  ;;  %v1884_v62 = vsub.s32 %v870_v51, %v872_v52  ;;  %s2111_s8 = smov (!%p1928_p7, %s1434_s8), 7 }
  0x11   : > { %s192_s25 = scalar_select %p191_p6, %s1735_s12, 1  ;;  %1608 = vmatprep.subr.bf16.mxu1 %v491_v7  ;;  %1590 = vmatprep.subr.bf16.mxu0 %v680_v8 }
  0x12   : > { %s1643_s26 = smul.u32 40, %s2109_s13  ;;  %s1435_s10 = sshll.u32 %s2109_s13, 3 }
  0x13   : > { %s1642_s27 = smul.u32 20, %s192_s25  ;;  %s204_s11 = sadd.s32 %s1435_s10, %s2111_s8 }
  0x14   : > { %s1436_s12 = sshll.u32 %s204_s11, 3 }
  0x15   : > { %s195_s28 = sadd.s32 %s1643_s26, %s1642_s27  ;;  %s1978_s20 = scalar_lea.vmem %s2096_s3, %s1436_s12 }
  0x16   : > { %s1433_s29 = sshll.u32 %s195_s28, 2 }
  0x17   : > { %s1824_s5 = scalar_lea.vmem %s2093_s0, %s1433_s29 }
  0x18   : > { %v1688_v9 = vld [vmem:[%s1824_s5 + $0x8] sm:$0xff]   ;;  %v1689_v10 = vld [vmem:[%s1824_s5] sm:$0xff]   ;;  %v1691_v11 = vld [vmem:[%s1824_s5 + $0x10] sm:$0xff]  }
  0x19   : > { %1556 = vmatprep.mubr.msk.bf16.mxu1 %vm292_vm2, %v1688_v9  ;;  %1574 = vmatprep.mubr.msk.bf16.mxu0 %vm292_vm2, %v1689_v10  ;;  %v1692_v12 = vld [vmem:[%s1824_s5 + $0x8] sm:$0xff]   ;;  %v1693_v13 = vld [vmem:[%s1824_s5 + $0x18] sm:$0xff]   ;;  %v1694_v14 = vld [vmem:[%s1824_s5 + $0x10] sm:$0xff]  }
  0x1a   : > { %1557 = vmatmul.mubr.msk.bf16.vlgmr.msra.gmra.mrb[0].mxu1 %vm292_vm2, %v1691_v11  ;;  %1575 = vmatmul.mubr.msk.bf16.vlgmr.msra.gmra.mrb[0].mxu0 %vm292_vm2, %v1692_v12  ;;  %v1695_v15 = vld [vmem:[%s1824_s5 + $0x20] sm:$0xff]   ;;  %v1696_v16 = vld [vmem:[%s1824_s5 + $0x18] sm:$0xff]   ;;  %v1697_v17 = vld [vmem:[%s1824_s5 + $0x28] sm:$0xff]  }
  0x1b   : > { %1609 = vmatpush3.bf16.msra.mxu1 %v491_v7  ;;  %1591 = vmatpush3.bf16.msra.mxu0 %v680_v8  ;;  %v1698_v18 = vld [vmem:[%s1824_s5 + $0x10] sm:$0xff]   ;;  %v1700_v20 = vld [vmem:[%s1824_s5 + $0x18] sm:$0xff]   ;;  %v1702_v22 = vld [vmem:[%s1824_s5 + $0x20] sm:$0xff]  }
  0x1c   : > { %1560 = vmatprep.mubr.msk.bf16.mxu1 %vm292_vm2, %v1693_v13  ;;  %1578 = vmatprep.mubr.msk.bf16.mxu0 %vm292_vm2, %v1694_v14  ;;  %v1699_v19 = vld [vmem:[%s1824_s5 + $0x30] sm:$0xff]   ;;  %v1701_v21 = vld [vmem:[%s1824_s5 + $0x38] sm:$0xff]   ;;  %v1703_v23 = vld [vmem:[%s1824_s5 + $0x40] sm:$0xff]  }
  0x1d   : > { %v1704_v24 = vld [vmem:[%s1824_s5 + $0x28] sm:$0xff]   ;;  %v1705_v25 = vld [vmem:[%s1824_s5 + $0x20] sm:$0xff]   ;;  %v1706_v26 = vld [vmem:[%s1824_s5 + $0x30] sm:$0xff]  }
  0x1e   : > { %v1707_v27 = vld [vmem:[%s1824_s5 + $0x28] sm:$0xff]   ;;  %v1708_v28 = vld [vmem:[%s1824_s5 + $0x38] sm:$0xff]   ;;  %v1709_v29 = vld [vmem:[%s1824_s5 + $0x30] sm:$0xff]  }
  0x1f   : > { %v1710_v30 = vld [vmem:[%s1824_s5 + $0x40] sm:$0xff]   ;;  %v1711_v31 = vld [vmem:[%s1824_s5 + $0x38] sm:$0xff]   ;;  %v1712_v32 = vld [vmem:[%s1824_s5 + $0x48] sm:$0xff]  }
  0x22   : > { %1561 = vmatmul.mubr.msk.bf16.gmra.mrb[4].mxu1 %vm292_vm2, %v1695_v15  ;;  %1579 = vmatmul.mubr.msk.bf16.gmra.mrb[4].mxu0 %vm292_vm2, %v1696_v16 }
  0x23   : > { %1564 = vmatprep.mubr.msk.bf16.mxu1 %vm292_vm2, %v1697_v17  ;;  %1592 = vmatprep.mubr.msk.bf16.mxu0 %vm292_vm2, %v1698_v18 }
  0x2a   : > { %1565 = vmatmul.mubr.msk.bf16.gmra.mrb[8].mxu1 %vm292_vm2, %v1699_v19  ;;  %1593 = vmatmul.mubr.msk.bf16.vlgmr.msra.gmra.mrb[0].mxu0 %vm292_vm2, %v1700_v20 }
  0x2b   : > { %1568 = vmatprep.mubr.msk.bf16.mxu1 %vm292_vm2, %v1701_v21  ;;  %1596 = vmatprep.mubr.msk.bf16.mxu0 %vm292_vm2, %v1702_v22 }
  0x32   : > { %1569 = vmatmul.mubr.msk.bf16.gmra.mrb[12].mxu1 %vm292_vm2, %v1703_v23  ;;  %1597 = vmatmul.mubr.msk.bf16.gmra.mrb[4].mxu0 %vm292_vm2, %v1704_v24 }
  0x33   : > { %1582 = vmatprep.mubr.msk.bf16.mxu1 %vm292_vm2, %v1705_v25  ;;  %1600 = vmatprep.mubr.msk.bf16.mxu0 %vm292_vm2, %v1706_v26 }
  0x3a   : > { %1583 = vmatmul.mubr.msk.bf16.vlgmr.msra.gmra.mrb[8].mxu1 %vm292_vm2, %v1707_v27  ;;  %1601 = vmatmul.mubr.msk.bf16.gmra.mrb[8].mxu0 %vm292_vm2, %v1708_v28 }
  0x3b   : > { %1586 = vmatprep.mubr.msk.bf16.mxu1 %vm292_vm2, %v1709_v29  ;;  %1604 = vmatprep.mubr.msk.bf16.mxu0 %vm292_vm2, %v1710_v30 }
  0x42   : > { %1587 = vmatmul.mubr.msk.bf16.gmra.mrb[12].mxu1 %vm292_vm2, %v1711_v31  ;;  %1605 = vmatmul.mubr.msk.bf16.gmra.mrb[12].mxu0 %vm292_vm2, %v1712_v32 }
  0xed   : > { %v1558_v33 = vpop.f32.mrb[0].mxu1 }
  0xee   : > { %v358_v34 = vpop.f32.mrb[1].mxu1 }
  0xef   : > { %v1559_v35 = vpop.f32.mrb[2].mxu1 }
  0xf0   : > { %v361_v36 = vpop.f32.mrb[3].mxu1 }
  0xf5   : > { %v1562_v37 = vpop.f32.mrb[4].mxu1 }
  0xf6   : > { %v374_v38 = vpop.f32.mrb[5].mxu1 }
  0xf7   : > { %v1563_v39 = vpop.f32.mrb[6].mxu1 }
  0xf8   : > { %v377_v40 = vpop.f32.mrb[7].mxu1 }
  0xfd   : > { %v1594_v44 = vpop.f32.mrb[0].mxu0 }
  0xfe   : > { %v1610_v46 = vadd.f32 %v1594_v44, %v1558_v33  ;;  %v716_v47 = vpop.f32.mrb[1].mxu0 }
  0xff   : > { %v1611_v48 = vadd.f32 %v716_v47, %v358_v34  ;;  %v1595_v49 = vpop.f32.mrb[2].mxu0 }
 0x100   : > { %v804_v50 = vadd.f32 %v1610_v46, %v1877_v45  ;;  %v1612_v53 = vadd.f32 %v1595_v49, %v1559_v35  ;;  %v719_v54 = vpop.f32.mrb[3].mxu0 }
 0x101   : > { %v802_v55 = vadd.f32 %v1611_v48, %v1877_v45  ;;  %v1613_v56 = vadd.f32 %v719_v54, %v361_v36 }
 0x102   : > { %v820_v57 = vmax.f32 %v804_v50, 0.0  ;;  %v805_v58 = vadd.f32 %v1612_v53, %v1877_v45 }
 0x103   : > { %v818_v59 = vmax.f32 %v802_v55, 0.0  ;;  %v803_v60 = vadd.f32 %v1613_v56, %v1877_v45 }
 0x104   : > { %v836_v61 = vsel %vm834_vm3, %v820_v57, -inf  ;;  %v821_v63 = vmax.f32 %v805_v58, 0.0 }
 0x105   : > { %v835_v0 = vsel %vm834_vm3, %v818_v59, -inf  ;;  %v819_v1 = vmax.f32 %v803_v60, 0.0  ;;  %v1598_v2 = vpop.f32.mrb[4].mxu0 }
 0x106   : > { %v837_v3 = vmax.f32 %v835_v0, %v836_v61  ;;  %v839_v4 = vsel %vm834_vm3, %v821_v63, -inf  ;;  %v1614_v5 = vadd.f32 %v1598_v2, %v1562_v37  ;;  %v732_v6 = vpop.f32.mrb[5].mxu0 }
 0x107   : > { %v838_v7 = vsel %vm834_vm3, %v819_v1, -inf  ;;  %v1615_v8 = vadd.f32 %v732_v6, %v374_v38  ;;  %v1599_v9 = vpop.f32.mrb[6].mxu0 }
 0x108   : > { %v867_v10 = vcombine.high %v837_v3, %v837_v3  ;;  %v874_v11 = vrot.slane %v837_v3, %v1884_v62  ;;  %v840_v12 = vmax.f32 %v838_v7, %v839_v4  ;;  %v1891_v13 = vadd.f32 %v1614_v5, %v1877_v45  ;;  %v735_v14 = vpop.f32.mrb[7].mxu0 }
 0x109   : > { %v1894_v15 = vadd.f32 %v1615_v8, %v1877_v45  ;;  %v1896_v16 = vadd.f32 %v1599_v9, %v1563_v39  ;;  %v1898_v17 = vadd.f32 %v735_v14, %v377_v40 }
 0x10a   : > { %v881_v18 = vrot.slane %v867_v10, %v1884_v62  ;;  %v882_v19 = vcombine.high %v874_v11, %v874_v11  ;;  %v1036_v20 = vsel %vm1035_vm4, %v874_v11, -inf  ;;  %v884_v21 = vcombine.high %v840_v12, %v840_v12 }
 0x10b   : > { %v1037_v22 = vrot.slane %v1036_v20, 4  ;;  %v891_v23 = vrot.slane %v840_v12, %v1884_v62  ;;  %v824_v24 = vmax.f32 %v1891_v13, 0.0  ;;  %v822_v25 = vmax.f32 %v1894_v15, 0.0 }
 0x10c   : > { %v883_v26 = vcombine.high %v881_v18, %v881_v18  ;;  %v1043_v27 = vsel %vm1035_vm4, %v882_v19, -inf  ;;  %v1050_v28 = vsel %vm1035_vm4, %v881_v18, -inf  ;;  %v898_v29 = vrot.slane %v884_v21, %v1884_v62 }
 0x10d   : > { %v1908_v30 = vpop.f32.mrb[8].mxu1  ;;  %v1038_v31 = vmax.f32 %v1036_v20, %v1037_v22  ;;  %v1044_v32 = vrot.slane %v1043_v27, 4  ;;  %v1051_v33 = vrot.slane %v1050_v28, 4  ;;  %v899_v34 = vcombine.high %v891_v23, %v891_v23  ;;  %v1911_v35 = vpop.f32.mrb[8].mxu0 }
 0x10e   : > { %v1913_v36 = vpop.f32.mrb[9].mxu1  ;;  %v1057_v37 = vsel %vm1035_vm4, %v883_v26, -inf  ;;  %v900_v38 = vcombine.high %v898_v29, %v898_v29  ;;  %v1064_v39 = vsel %vm1035_vm4, %v891_v23, -inf  ;;  %v1078_v40 = vsel %vm1035_vm4, %v898_v29, -inf  ;;  %v1918_v41 = vpop.f32.mrb[9].mxu0 }
 0x10f   : > { %v1920_v42 = vpop.f32.mrb[10].mxu1  ;;  %v1039_v43 = vrot.slane %v1038_v31, 2  ;;  %v1045_v44 = vmax.f32 %v1043_v27, %v1044_v32  ;;  %v1052_v46 = vmax.f32 %v1050_v28, %v1051_v33  ;;  %v1058_v47 = vrot.slane %v1057_v37, 4  ;;  %v1922_v48 = vpop.f32.mrb[10].mxu0 }
 0x110   : > { %v1924_v49 = vpop.f32.mrb[11].mxu1  ;;  %v1065_v50 = vrot.slane %v1064_v39, 4  ;;  %v1071_v51 = vsel %vm1035_vm4, %v899_v34, -inf  ;;  %v1079_v52 = vrot.slane %v1078_v40, 4  ;;  %v1085_v53 = vsel %vm1035_vm4, %v900_v38, -inf  ;;  %v1934_v54 = vpop.f32.mrb[11].mxu0 }
 0x111   : > { %v1040_v55 = vmax.f32 %v1038_v31, %v1039_v43  ;;  %v1046_v56 = vrot.slane %v1045_v44, 2  ;;  %v1053_v57 = vrot.slane %v1052_v46, 2  ;;  %v1059_v58 = vmax.f32 %v1057_v37, %v1058_v47 }
 0x112   : > { %v1066_v59 = vmax.f32 %v1064_v39, %v1065_v50  ;;  %v1072_v60 = vrot.slane %v1071_v51, 4  ;;  %v1080_v61 = vmax.f32 %v1078_v40, %v1079_v52  ;;  %v1086_v63 = vrot.slane %v1085_v53, 4 }
 0x113   : > { %v1041_v0 = vrot.slane %v1040_v55, 1  ;;  %v1047_v1 = vmax.f32 %v1045_v44, %v1046_v56  ;;  %v1054_v2 = vmax.f32 %v1052_v46, %v1053_v57  ;;  %v1060_v3 = vrot.slane %v1059_v58, 2 }
 0x114   : > { %v1067_v4 = vrot.slane %v1066_v59, 2  ;;  %v1073_v5 = vmax.f32 %v1071_v51, %v1072_v60  ;;  %v1081_v6 = vrot.slane %v1080_v61, 2  ;;  %v1087_v7 = vmax.f32 %v1085_v53, %v1086_v63 }
 0x115   : > { %v1940_v8 = vpop.f32.mrb[12].mxu1  ;;  %v1042_v9 = vmax.f32 %v1040_v55, %v1041_v0  ;;  %v1048_v10 = vrot.slane %v1047_v1, 1  ;;  %v1055_v11 = vrot.slane %v1054_v2, 1  ;;  %v1061_v12 = vmax.f32 %v1059_v58, %v1060_v3  ;;  %v1943_v14 = vpop.f32.mrb[12].mxu0 }
 0x116   : > { %v1945_v18 = vpop.f32.mrb[13].mxu1  ;;  %v1068_v19 = vmax.f32 %v1066_v59, %v1067_v4  ;;  %v1074_v20 = vrot.slane %v1073_v5, 2  ;;  %v1082_v21 = vmax.f32 %v1080_v61, %v1081_v6  ;;  %v1088_v22 = vrot.slane %v1087_v7, 2  ;;  %v1947_v23 = vpop.f32.mrb[13].mxu0 }
 0x117   : > { %v1949_v26 = vpop.f32.mrb[14].mxu1  ;;  %v1049_v27 = vmax.f32 %v1047_v1, %v1048_v10  ;;  %v1056_v28 = vmax.f32 %v1054_v2, %v1055_v11  ;;  %v1062_v29 = vrot.slane %v1061_v12, 1  ;;  %v842_v31 = vsel %vm834_vm3, %v824_v24, -inf  ;;  %v1954_v32 = vpop.f32.mrb[14].mxu0 }
 0x118   : > { %v1956_v33 = vpop.f32.mrb[15].mxu1  ;;  %v1069_v34 = vrot.slane %v1068_v19, 1  ;;  %v1075_v37 = vmax.f32 %v1073_v5, %v1074_v20  ;;  %v1083_v38 = vrot.slane %v1082_v21, 1  ;;  %v1089_v39 = vmax.f32 %v1087_v7, %v1088_v22  ;;  %v1958_v40 = vpop.f32.mrb[15].mxu0 }
 0x119   : > { %v1063_v43 = vmax.f32 %v1061_v12, %v1062_v29  ;;  %v1293_v44 = vsel %vm1292_vm5, %v1049_v27, %v1042_v9  ;;  %v841_v13 = vsel %vm834_vm3, %v822_v25, -inf  ;;  %v809_v24 = vadd.f32 %v1896_v16, %v1877_v45 }
 0x11a   : > { %v1295_v46 = vsel %vm1294_vm6, %v1056_v28, %v1293_v44  ;;  %v1070_v47 = vmax.f32 %v1068_v19, %v1069_v34  ;;  %v1076_v50 = vrot.slane %v1075_v37, 1  ;;  %v1084_v51 = vmax.f32 %v1082_v21, %v1083_v38 }
 0x11b   : > { %v1090_v52 = vrot.slane %v1089_v39, 1  ;;  %v1297_v53 = vsel %vm1296_vm7, %v1063_v43, %v1295_v46  ;;  %v843_v55 = vmax.f32 %v841_v13, %v842_v31  ;;  %v825_v56 = vmax.f32 %v809_v24, 0.0 }
 0x11c   : > { %v1077_v57 = vmax.f32 %v1075_v37, %v1076_v50  ;;  %v1299_v58 = vsel %vm1298_vm8, %v1070_v47, %v1297_v53  ;;  %v807_v15 = vadd.f32 %v1898_v17, %v1877_v45  ;;  %v1618_v16 = vadd.f32 %v1911_v35, %v1908_v30 }
 0x11d   : > { %v1091_v25 = vmax.f32 %v1089_v39, %v1090_v52  ;;  %v901_v59 = vcombine.high %v843_v55, %v843_v55  ;;  %v908_v60 = vrot.slane %v843_v55, %v1884_v62  ;;  %v845_v61 = vsel %vm834_vm3, %v825_v56, -inf }
 0x11e   : > { %v1301_v63 = vsel %vm1300_vm9, %v1077_v57, %v1299_v58  ;;  %v823_v0 = vmax.f32 %v807_v15, 0.0  ;;  %v812_v17 = vadd.f32 %v1618_v16, %v1877_v45  ;;  %v1619_v30 = vadd.f32 %v1918_v41, %v1913_v36 }
 0x11f   : > { %v1303_v35 = vsel %vm1302_vm10, %v1084_v51, %v1301_v63  ;;  %v915_v1 = vrot.slane %v901_v59, %v1884_v62  ;;  %v916_v2 = vcombine.high %v908_v60, %v908_v60  ;;  %v1092_v3 = vsel %vm1035_vm4, %v908_v60, -inf }
 0x120   : > { %v1305_v4 = vsel %vm1304_vm11, %v1091_v25, %v1303_v35  ;;  %v1093_v5 = vrot.slane %v1092_v3, 4  ;;  %v844_v6 = vsel %vm834_vm3, %v823_v0, -inf  ;;  %v828_v7 = vmax.f32 %v812_v17, 0.0 }
 0x121   : > { %1331 = vst.msk [vmem:[%s1978_s20] sm:$0xff] %vm834_vm3, %v1305_v4  ;;  %v917_v9 = vcombine.high %v915_v1, %v915_v1  ;;  %v1099_v10 = vsel %vm1035_vm4, %v916_v2, -inf  ;;  %v1106_v36 = vsel %vm1035_vm4, %v915_v1, -inf  ;;  %v846_v41 = vmax.f32 %v844_v6, %v845_v61 }
 0x122   : > { %v1094_v11 = vmax.f32 %v1092_v3, %v1093_v5  ;;  %v1100_v12 = vrot.slane %v1099_v10, 4  ;;  %v1107_v19 = vrot.slane %v1106_v36, 4  ;;  %v848_v20 = vsel %vm834_vm3, %v828_v7, -inf }
 0x123   : > { %v1113_v21 = vsel %vm1035_vm4, %v917_v9, -inf  ;;  %v918_v22 = vcombine.high %v846_v41, %v846_v41  ;;  %v925_v27 = vrot.slane %v846_v41, %v1884_v62  ;;  %v810_v28 = vadd.f32 %v1619_v30, %v1877_v45 }
 0x124   : > { %v1095_v29 = vrot.slane %v1094_v11, 2  ;;  %v1101_v31 = vmax.f32 %v1099_v10, %v1100_v12  ;;  %v1108_v34 = vmax.f32 %v1106_v36, %v1107_v19  ;;  %v1114_v37 = vrot.slane %v1113_v21, 4 }
 0x125   : > { %v932_v38 = vrot.slane %v918_v22, %v1884_v62  ;;  %v933_v39 = vcombine.high %v925_v27, %v925_v27  ;;  %v1120_v43 = vsel %vm1035_vm4, %v925_v27, -inf  ;;  %v826_v44 = vmax.f32 %v810_v28, 0.0 }
 0x126   : > { %v1096_v13 = vmax.f32 %v1094_v11, %v1095_v29  ;;  %v1102_v24 = vrot.slane %v1101_v31, 2  ;;  %v1109_v46 = vrot.slane %v1108_v34, 2  ;;  %v1115_v47 = vmax.f32 %v1113_v21, %v1114_v37 }
 0x127   : > { %v934_v50 = vcombine.high %v932_v38, %v932_v38  ;;  %v1121_v51 = vrot.slane %v1120_v43, 4  ;;  %v1127_v52 = vsel %vm1035_vm4, %v933_v39, -inf  ;;  %v1134_v53 = vsel %vm1035_vm4, %v932_v38, -inf }
 0x128   : > { %v1097_v55 = vrot.slane %v1096_v13, 1  ;;  %v1103_v56 = vmax.f32 %v1101_v31, %v1102_v24  ;;  %v1110_v57 = vmax.f32 %v1108_v34, %v1109_v46  ;;  %v1116_v58 = vrot.slane %v1115_v47, 2 }
 0x129   : > { %v1122_v15 = vmax.f32 %v1120_v43, %v1121_v51  ;;  %v1128_v16 = vrot.slane %v1127_v52, 4  ;;  %v1135_v25 = vrot.slane %v1134_v53, 4  ;;  %v1141_v59 = vsel %vm1035_vm4, %v934_v50, -inf }
 0x12a   : > { %v1098_v60 = vmax.f32 %v1096_v13, %v1097_v55  ;;  %v1104_v61 = vrot.slane %v1103_v56, 1  ;;  %v1111_v63 = vrot.slane %v1110_v57, 1  ;;  %v1117_v0 = vmax.f32 %v1115_v47, %v1116_v58 }
 0x12b   : > { %v1123_v17 = vrot.slane %v1122_v15, 2  ;;  %v1129_v30 = vmax.f32 %v1127_v52, %v1128_v16  ;;  %v1136_v35 = vmax.f32 %v1134_v53, %v1135_v25  ;;  %v1142_v1 = vrot.slane %v1141_v59, 4 }
 0x12c   : > { %v1105_v2 = vmax.f32 %v1103_v56, %v1104_v61  ;;  %v1112_v3 = vmax.f32 %v1110_v57, %v1111_v63  ;;  %v1118_v4 = vrot.slane %v1117_v0, 1  ;;  %v847_v5 = vsel %vm834_vm3, %v826_v44, -inf }
 0x12d   : > { %v1124_v6 = vmax.f32 %v1122_v15, %v1123_v17  ;;  %v1130_v7 = vrot.slane %v1129_v30, 2  ;;  %v1137_v9 = vrot.slane %v1136_v35, 2  ;;  %v1143_v10 = vmax.f32 %v1141_v59, %v1142_v1 }
 0x12e   : > { %v1119_v36 = vmax.f32 %v1117_v0, %v1118_v4  ;;  %v1306_v41 = vsel %vm1292_vm5, %v1105_v2, %v1098_v60  ;;  %v849_v11 = vmax.f32 %v847_v5, %v848_v20  ;;  %v1620_v12 = vadd.f32 %v1922_v48, %v1920_v42 }
 0x12f   : > { %v1307_v19 = vsel %vm1294_vm6, %v1112_v3, %v1306_v41  ;;  %v1125_v21 = vrot.slane %v1124_v6, 1  ;;  %v1131_v22 = vmax.f32 %v1129_v30, %v1130_v7  ;;  %v1138_v27 = vmax.f32 %v1136_v35, %v1137_v9 }
 0x130   : > { %v1144_v28 = vrot.slane %v1143_v10, 2  ;;  %v1308_v29 = vsel %vm1296_vm7, %v1119_v36, %v1307_v19  ;;  %v935_v31 = vcombine.high %v849_v11, %v849_v11  ;;  %v942_v34 = vrot.slane %v849_v11, %v1884_v62 }
 0x131   : > { %v1126_v37 = vmax.f32 %v1124_v6, %v1125_v21  ;;  %v1132_v38 = vrot.slane %v1131_v22, 1  ;;  %v1139_v39 = vrot.slane %v1138_v27, 1  ;;  %v813_v43 = vadd.f32 %v1620_v12, %v1877_v45 }
 0x132   : > { %v1145_v20 = vmax.f32 %v1143_v10, %v1144_v28  ;;  %v949_v44 = vrot.slane %v935_v31, %v1884_v62  ;;  %v950_v42 = vcombine.high %v942_v34, %v942_v34  ;;  %v1148_v48 = vsel %vm1035_vm4, %v942_v34, -inf }
 0x133   : > { %v1133_v13 = vmax.f32 %v1131_v22, %v1132_v38  ;;  %v1140_v24 = vmax.f32 %v1138_v27, %v1139_v39  ;;  %v1309_v46 = vsel %vm1298_vm8, %v1126_v37, %v1308_v29  ;;  %v1149_v47 = vrot.slane %v1148_v48, 4 }
 0x134   : > { %v1146_v50 = vrot.slane %v1145_v20, 1  ;;  %v951_v51 = vcombine.high %v949_v44, %v949_v44  ;;  %v1155_v52 = vsel %vm1035_vm4, %v950_v42, -inf  ;;  %v1162_v53 = vsel %vm1035_vm4, %v949_v44, -inf }
 0x135   : > { %v1310_v55 = vsel %vm1300_vm9, %v1133_v13, %v1309_v46  ;;  %v1150_v56 = vmax.f32 %v1148_v48, %v1149_v47  ;;  %v1156_v57 = vrot.slane %v1155_v52, 4  ;;  %v1163_v58 = vrot.slane %v1162_v53, 4 }
 0x136   : > { %v1147_v15 = vmax.f32 %v1145_v20, %v1146_v50  ;;  %v1311_v16 = vsel %vm1302_vm10, %v1140_v24, %v1310_v55  ;;  %v1169_v25 = vsel %vm1035_vm4, %v951_v51, -inf  ;;  %v829_v59 = vmax.f32 %v813_v43, 0.0 }
 0x137   : > { %v1151_v60 = vrot.slane %v1150_v56, 2  ;;  %v1157_v61 = vmax.f32 %v1155_v52, %v1156_v57  ;;  %v1164_v63 = vmax.f32 %v1162_v53, %v1163_v58  ;;  %v1170_v0 = vrot.slane %v1169_v25, 4 }
 0x138   : > { %v1312_v17 = vsel %vm1304_vm11, %v1147_v15, %v1311_v16  ;;  %v851_v30 = vsel %vm834_vm3, %v829_v59, -inf  ;;  %v1621_v35 = vadd.f32 %v1934_v54, %v1924_v49  ;;  %v1622_v1 = vadd.f32 %v1943_v14, %v1940_v8 }
 0x139   : > { %1332 = vst.msk [vmem:[%s1978_s20 + $0x8] sm:$0xff] %vm834_vm3, %v1312_v17  ;;  %v1152_v2 = vmax.f32 %v1150_v56, %v1151_v60  ;;  %v1158_v3 = vrot.slane %v1157_v61, 2  ;;  %v1165_v4 = vrot.slane %v1164_v63, 2  ;;  %v1171_v5 = vmax.f32 %v1169_v25, %v1170_v0 }
 0x13a   : > { %v811_v6 = vadd.f32 %v1621_v35, %v1877_v45  ;;  %v816_v7 = vadd.f32 %v1622_v1, %v1877_v45  ;;  %v1623_v9 = vadd.f32 %v1947_v23, %v1945_v18  ;;  %v1624_v10 = vadd.f32 %v1954_v32, %v1949_v26 }
 0x13b   : > { %v1153_v49 = vrot.slane %v1152_v2, 1  ;;  %v1159_v54 = vmax.f32 %v1157_v61, %v1158_v3  ;;  %v1166_v36 = vmax.f32 %v1164_v63, %v1165_v4  ;;  %v1172_v8 = vrot.slane %v1171_v5, 2 }
 0x13c   : > { %v827_v14 = vmax.f32 %v811_v6, 0.0  ;;  %v832_v41 = vmax.f32 %v816_v7, 0.0  ;;  %v814_v11 = vadd.f32 %v1623_v9, %v1877_v45  ;;  %v817_v12 = vadd.f32 %v1624_v10, %v1877_v45 }
 0x13d   : > { %v1154_v19 = vmax.f32 %v1152_v2, %v1153_v49  ;;  %v1160_v21 = vrot.slane %v1159_v54, 1  ;;  %v1167_v22 = vrot.slane %v1166_v36, 1  ;;  %v1173_v27 = vmax.f32 %v1171_v5, %v1172_v8 }
 0x13e   : > { %v850_v28 = vsel %vm834_vm3, %v827_v14, -inf  ;;  %v854_v18 = vsel %vm834_vm3, %v832_v41, -inf  ;;  %v830_v23 = vmax.f32 %v814_v11, 0.0  ;;  %v833_v26 = vmax.f32 %v817_v12, 0.0 }
 0x13f   : > { %v1161_v32 = vmax.f32 %v1159_v54, %v1160_v21  ;;  %v1168_v29 = vmax.f32 %v1166_v36, %v1167_v22  ;;  %v1174_v31 = vrot.slane %v1173_v27, 1  ;;  %v852_v34 = vmax.f32 %v850_v28, %v851_v30 }
 0x140   : > { %v853_v37 = vsel %vm834_vm3, %v830_v23, -inf  ;;  %v1625_v38 = vadd.f32 %v1958_v40, %v1956_v33  ;;  %v857_v50 = vsel %vm834_vm3, %v833_v26, -inf }
 0x141   : > { %v1175_v39 = vmax.f32 %v1173_v27, %v1174_v31  ;;  %v1313_v43 = vsel %vm1292_vm5, %v1161_v32, %v1154_v19  ;;  %v952_v20 = vcombine.high %v852_v34, %v852_v34  ;;  %v959_v44 = vrot.slane %v852_v34, %v1884_v62 }
 0x142   : > { %v1314_v42 = vsel %vm1294_vm6, %v1168_v29, %v1313_v43  ;;  %v855_v48 = vmax.f32 %v853_v37, %v854_v18  ;;  %v815_v13 = vadd.f32 %v1625_v38, %v1877_v45 }
 0x143   : > { %v966_v24 = vrot.slane %v952_v20, %v1884_v62  ;;  %v967_v46 = vcombine.high %v959_v44, %v959_v44  ;;  %v1176_v47 = vsel %vm1035_vm4, %v959_v44, -inf  ;;  %v1315_v57 = vsel %vm1296_vm7, %v1175_v39, %v1314_v42 }
 0x144   : > { %v1177_v51 = vrot.slane %v1176_v47, 4  ;;  %v969_v33 = vcombine.high %v855_v48, %v855_v48  ;;  %v976_v40 = vrot.slane %v855_v48, %v1884_v62  ;;  %v831_v52 = vmax.f32 %v815_v13, 0.0 }
 0x145   : > { %v968_v53 = vcombine.high %v966_v24, %v966_v24  ;;  %v1183_v55 = vsel %vm1035_vm4, %v967_v46, -inf  ;;  %v1190_v56 = vsel %vm1035_vm4, %v966_v24, -inf }
 0x146   : > { %v1178_v45 = vmax.f32 %v1176_v47, %v1177_v51  ;;  %v1184_v58 = vrot.slane %v1183_v55, 4  ;;  %v1191_v15 = vrot.slane %v1190_v56, 4  ;;  %v983_v16 = vrot.slane %v969_v33, %v1884_v62 }
 0x147   : > { %v1197_v25 = vsel %vm1035_vm4, %v968_v53, -inf  ;;  %v984_v59 = vcombine.high %v976_v40, %v976_v40  ;;  %v1204_v60 = vsel %vm1035_vm4, %v976_v40, -inf  ;;  %v856_v61 = vsel %vm834_vm3, %v831_v52, -inf }
 0x148   : > { %v1179_v63 = vrot.slane %v1178_v45, 2  ;;  %v1185_v0 = vmax.f32 %v1183_v55, %v1184_v58  ;;  %v1192_v17 = vmax.f32 %v1190_v56, %v1191_v15  ;;  %v1198_v30 = vrot.slane %v1197_v25, 4 }
 0x149   : > { %v985_v35 = vcombine.high %v983_v16, %v983_v16  ;;  %v1205_v1 = vrot.slane %v1204_v60, 4  ;;  %v1211_v2 = vsel %vm1035_vm4, %v984_v59, -inf  ;;  %v1218_v3 = vsel %vm1035_vm4, %v983_v16, -inf }
 0x14a   : > { %v1180_v4 = vmax.f32 %v1178_v45, %v1179_v63  ;;  %v1186_v5 = vrot.slane %v1185_v0, 2  ;;  %v1193_v6 = vrot.slane %v1192_v17, 2  ;;  %v1199_v7 = vmax.f32 %v1197_v25, %v1198_v30 }
 0x14b   : > { %v1206_v9 = vmax.f32 %v1204_v60, %v1205_v1  ;;  %v1212_v10 = vrot.slane %v1211_v2, 4  ;;  %v1219_v49 = vrot.slane %v1218_v3, 4  ;;  %v1225_v54 = vsel %vm1035_vm4, %v985_v35, -inf }
 0x14c   : > { %v1181_v36 = vrot.slane %v1180_v4, 1  ;;  %v1187_v8 = vmax.f32 %v1185_v0, %v1186_v5  ;;  %v1194_v14 = vmax.f32 %v1192_v17, %v1193_v6  ;;  %v1200_v41 = vrot.slane %v1199_v7, 2 }
 0x14d   : > { %v1207_v11 = vrot.slane %v1206_v9, 2  ;;  %v1213_v12 = vmax.f32 %v1211_v2, %v1212_v10  ;;  %v1220_v19 = vmax.f32 %v1218_v3, %v1219_v49  ;;  %v1226_v21 = vrot.slane %v1225_v54, 4 }
 0x14e   : > { %v1182_v22 = vmax.f32 %v1180_v4, %v1181_v36  ;;  %v1188_v27 = vrot.slane %v1187_v8, 1  ;;  %v1195_v28 = vrot.slane %v1194_v14, 1  ;;  %v1201_v18 = vmax.f32 %v1199_v7, %v1200_v41 }
 0x14f   : > { %v1208_v23 = vmax.f32 %v1206_v9, %v1207_v11  ;;  %v1214_v26 = vrot.slane %v1213_v12, 2  ;;  %v1221_v32 = vrot.slane %v1220_v19, 2  ;;  %v1227_v29 = vmax.f32 %v1225_v54, %v1226_v21 }
 0x150   : > { %v1189_v31 = vmax.f32 %v1187_v8, %v1188_v27  ;;  %v1196_v34 = vmax.f32 %v1194_v14, %v1195_v28  ;;  %v1202_v37 = vrot.slane %v1201_v18, 1  ;;  %v1316_v38 = vsel %vm1298_vm8, %v1182_v22, %v1315_v57 }
 0x151   : > { %v1209_v39 = vrot.slane %v1208_v23, 1  ;;  %v1215_v43 = vmax.f32 %v1213_v12, %v1214_v26  ;;  %v1222_v20 = vmax.f32 %v1220_v19, %v1221_v32  ;;  %v1228_v44 = vrot.slane %v1227_v29, 2 }
 0x152   : > { %v1203_v42 = vmax.f32 %v1201_v18, %v1202_v37  ;;  %v1317_v48 = vsel %vm1300_vm9, %v1189_v31, %v1316_v38  ;;  %v858_v13 = vmax.f32 %v856_v61, %v857_v50 }
 0x153   : > { %v1318_v24 = vsel %vm1302_vm10, %v1196_v34, %v1317_v48  ;;  %v1216_v46 = vrot.slane %v1215_v43, 1  ;;  %v1223_v47 = vrot.slane %v1222_v20, 1  ;;  %v1229_v33 = vmax.f32 %v1227_v29, %v1228_v44 }
 0x154   : > { %v1319_v51 = vsel %vm1304_vm11, %v1203_v42, %v1318_v24  ;;  %v986_v40 = vcombine.high %v858_v13, %v858_v13  ;;  %v993_v52 = vrot.slane %v858_v13, %v1884_v62  ;;  %v1210_v53 = vmax.f32 %v1208_v23, %v1209_v39 }
 0x155   : > { %1333 = vst.msk [vmem:[%s1978_s20 + $0x10] sm:$0xff] %vm834_vm3, %v1319_v51  ;;  %v1217_v55 = vmax.f32 %v1215_v43, %v1216_v46  ;;  %v1224_v56 = vmax.f32 %v1222_v20, %v1223_v47  ;;  %v1230_v57 = vrot.slane %v1229_v33, 1 }
 0x156   : > { %v1000_v45 = vrot.slane %v986_v40, %v1884_v62  ;;  %v1001_v58 = vcombine.high %v993_v52, %v993_v52  ;;  %v1232_v50 = vsel %vm1035_vm4, %v993_v52, -inf }
 0x157   : > { %v1320_v15 = vsel %vm1292_vm5, %v1217_v55, %v1210_v53  ;;  %v1233_v16 = vrot.slane %v1232_v50, 4  ;;  %v1231_v25 = vmax.f32 %v1229_v33, %v1230_v57 }
 0x158   : > { %v1321_v59 = vsel %vm1294_vm6, %v1224_v56, %v1320_v15  ;;  %v1002_v60 = vcombine.high %v1000_v45, %v1000_v45  ;;  %v1239_v61 = vsel %vm1035_vm4, %v1001_v58, -inf  ;;  %v1246_v17 = vsel %vm1035_vm4, %v1000_v45, -inf }
 0x159   : > { %v1234_v63 = vmax.f32 %v1232_v50, %v1233_v16  ;;  %v1240_v0 = vrot.slane %v1239_v61, 4  ;;  %v1247_v30 = vrot.slane %v1246_v17, 4  ;;  %v1322_v62 = vsel %vm1296_vm7, %v1231_v25, %v1321_v59 }
 0x15a   : > { %v1253_v35 = vsel %vm1035_vm4, %v1002_v60, -inf }
 0x15b   : > { %v1235_v1 = vrot.slane %v1234_v63, 2  ;;  %v1241_v2 = vmax.f32 %v1239_v61, %v1240_v0  ;;  %v1254_v3 = vrot.slane %v1253_v35, 4  ;;  %v1248_v4 = vmax.f32 %v1246_v17, %v1247_v30 }
 0x15d   : > { %v1236_v5 = vmax.f32 %v1234_v63, %v1235_v1  ;;  %v1242_v6 = vrot.slane %v1241_v2, 2  ;;  %v1255_v7 = vmax.f32 %v1253_v35, %v1254_v3  ;;  %v1249_v9 = vrot.slane %v1248_v4, 2 }
 0x15f   : > { %v1237_v10 = vrot.slane %v1236_v5, 1  ;;  %v1243_v49 = vmax.f32 %v1241_v2, %v1242_v6  ;;  %v1256_v54 = vrot.slane %v1255_v7, 2  ;;  %v1250_v36 = vmax.f32 %v1248_v4, %v1249_v9 }
 0x161   : > { %v1238_v8 = vmax.f32 %v1236_v5, %v1237_v10  ;;  %v1244_v14 = vrot.slane %v1243_v49, 1  ;;  %v1257_v41 = vmax.f32 %v1255_v7, %v1256_v54  ;;  %v1251_v11 = vrot.slane %v1250_v36, 1 }
 0x163   : > { %v1245_v12 = vmax.f32 %v1243_v49, %v1244_v14  ;;  %v1258_v19 = vrot.slane %v1257_v41, 1  ;;  %v1323_v21 = vsel %vm1298_vm8, %v1238_v8, %v1322_v62  ;;  %v1252_v22 = vmax.f32 %v1250_v36, %v1251_v11 }
 0x165   : > { %v1259_v27 = vmax.f32 %v1257_v41, %v1258_v19  ;;  %v1324_v28 = vsel %vm1300_vm9, %v1245_v12, %v1323_v21 }
 0x166   : > { %v1325_v18 = vsel %vm1302_vm10, %v1252_v22, %v1324_v28 }
 0x167   : > { %v1326_v23 = vsel %vm1304_vm11, %v1259_v27, %v1325_v18 }
 0x168   : > { %1334 = vst.msk [vmem:[%s1978_s20 + $0x18] sm:$0xff] %vm834_vm3, %v1326_v23 }
 0x169 PF: > { %s13_s16 = sadd.s32 1, %s1751_s16   ;;  %s2098_s12 = smov %s1743_s14 }
 0x16a   : > { %p10_p8 = scmp.ge.s32.totalorder %s13_s16, 6   ;;  %s2099_s13 = smov %s1747_s15 }
 0x16b   : > { %s2100_s14 = smov %s2103_s17  ;;  %s2101_s15 = smov %s2107_s18 }
 0x16c   :  { %12 = sbr.rel (!%p10_p8) target bundleno = 3 (0x3), region = 66 }

// kernel: feature_extraction_forward.5
= control target key start
LH: loop header
LB: loop body
LE: loop exit
PB: predicated region body
PF: predicated region fallthrough
CT: control target
= control target key end

     0   :  { %8 = vsyncpa [#allocation3], 0  ;;  %s2351_s0 = inlined_call_operand.vmem [shape: bf16[2,1,6,4,384], index: 0, kind: input, shape index: {}]   ;;  %s2352_s1 = inlined_call_operand.vmem [shape: bf16[3,384,128], index: 1, kind: input, shape index: {}]   ;;  %s2353_s2 = inlined_call_operand.vmem [shape: f32[1,128], index: 2, kind: input, shape index: {}]   ;;  %s2354_s3 = inlined_call_operand.hbm [shape: f32[2,2,2,128], index: 3, kind: output, shape index: {}]  }
   0x1   :  { %10 = vsyncpa [#allocation3 + $0x1], 0  ;;  %s1949_s12 = smov 0   ;;  %s1951_s13 = smov 0  }
   0x2   :  { %s1953_s14 = smov 0   ;;  %s1955_s15 = smov 0  }
   0x3   :  { %s1957_s16 = smov 0   ;;  %s1959_s17 = smov 0  }
   0x4 LB: > { %s1349_s18 = sadd.s32 4294967295, %s1921_s17   ;;  %s1350_s19 = sadd.s32 4294967294, %s1921_s17   ;;  %s1921_s17 = sphi %s1959_s17, %s16_s17   ;;  %s1917_s16 = sphi %s1957_s16, %s2361_s16   ;;  %s1913_s15 = sphi %s1955_s15, %s2360_s15   ;;  %s1909_s14 = sphi %s1953_s14, %s2359_s14   ;;  %s1905_s13 = sphi %s1951_s13, %s2358_s13   ;;  %s1901_s12 = sphi %s1949_s12, %s2357_s12  }
   0x5   : > { %s28_s20 = sadd.s32 1, %s1917_s16  ;;  %s107_s21 = sadd.s32 1, %s1909_s14 }
   0x6   : > { %p30_p0 = scmp.ge.s32.totalorder %s28_s20, 2  ;;  %p117_p1 = scmp.ne.s32.totalorder %s1909_s14, %s1905_s13 }
   0x7   : > { %p118_p2 = scmp.eq.s32.totalorder %s1349_s18, 1  ;;  %p123_p3 = scmp.ne.s32.totalorder %s1905_s13, %s1901_s12 }
   0x8   : > { %s2363_s20 = smov (%p30_p0, %s28_s20), 0  ;;  %p124_p5 = scmp.eq.s32.totalorder %s1350_s19, 1 }
   0x9   : > { %p1989_p4 = por %p118_p2, %p117_p1  ;;  %s102_s23 = ssub.s32 %s1917_s16, %s2363_s20 }
   0xa   : > { %p1353_p6 = scmp.ge.s32.totalorder %s1921_s17, 1  ;;  %p105_p7 = scmp.eq.s32.totalorder %s102_s23, 0 }
   0xb   : > { %p1996_p8 = por %p124_p5, %p123_p3  ;;  %p160_p9 = scmp.lt.s32.totalorder %s1921_s17, 3 }
   0xc   : > { %s2002_s25 = scalar_select %p105_p7, %s1909_s14, %s107_s21  }
   0xd   : > { %p161_p10 = pnand %p1353_p6, %p160_p9 }
   0xe   : > { %v1753_v0 = vld [vmem:[%s2352_s1 + $0x100] sm:$0xff] (!%p161_p10)   ;;  %v1923_v1 = vmov (!%p161_p10), 0.0   ;;  %v1756_v4 = vld [vmem:[%s2352_s1 + $0x108] sm:$0xff] (!%p161_p10)   ;;  %v1759_v7 = vld [vmem:[%s2352_s1 + $0x110] sm:$0xff] (!%p161_p10)   ;;  %vm1924_vm0 = vmmov (!%p161_p10), 0   ;;  %p188_p11 = scmp.lt.s32.totalorder (!%p161_p10), %s1913_s15, 1  ;;  %v316_v23 = vlaneseq (!%p161_p10) }
   0xf   : > { %164 = sbr.rel (%p161_p10) target bundleno = 374 (0x176), region = 32  ;;  %1632 = vmatprep.subr.bf16.mxu1 (!%p161_p10), %v1923_v1  ;;  %v1754_v2 = vld [vmem:[%s2352_s1 + $0xc0] sm:$0xff] (!%p161_p10)   ;;  %1539 = vmatprep.subr.bf16.mxu0 (!%p161_p10), %v1753_v0  ;;  %v1757_v5 = vld [vmem:[%s2352_s1 + $0xc8] sm:$0xff] (!%p161_p10)   ;;  %v1760_v8 = vld [vmem:[%s2352_s1 + $0xd0] sm:$0xff] (!%p161_p10)   ;;  %v1925_v28 = vmov (!%p161_p10), 1983009808  }
  0x10   : > { %v1755_v3 = vld [vmem:[%s2352_s1 + $0x140] sm:$0xff] (!%p161_p10)   ;;  %1540 = vmatpush3.bf16.msra.mxu0 (!%p161_p10), %v1754_v2  ;;  %v1758_v6 = vld [vmem:[%s2352_s1 + $0x148] sm:$0xff] (!%p161_p10)   ;;  %1648 = vmatprep.mubr.msk.bf16.mxu1 (!%p161_p10), %vm1924_vm0, %v1923_v1  ;;  %v1761_v9 = vld [vmem:[%s2352_s1 + $0x150] sm:$0xff] (!%p161_p10)   ;;  %v314_v29 = vunpack.c.l.s4 (!%p161_p10), %v1925_v28  ;;  %v317_v30 = vshrl.u32 (!%p161_p10), %v316_v23, 7  ;;  %vm1182_vm1 = vcmask (!%p161_p10), 1043456   ;;  %vm1211_vm2 = vcmask (!%p161_p10), 1041408  }
  0x11   : > { %1633 = vmatpush3.bf16.msra.mxu1 (!%p161_p10), %v1755_v3  ;;  %1541 = vmatprep.subr.bf16.mxu0 (!%p161_p10), %v1756_v4  ;;  %v1762_v10 = vld [vmem:[%s2352_s1 + $0x118] sm:$0xff] (!%p161_p10)   ;;  %v1765_v13 = vld [vmem:[%s2352_s1 + $0x120] sm:$0xff] (!%p161_p10)   ;;  %v1768_v16 = vld [vmem:[%s2352_s1 + $0x128] sm:$0xff] (!%p161_p10)   ;;  %vm1244_vm3 = vcmask (!%p161_p10), 1041409   ;;  %s1538_s4 = sshll.u32 (!%p161_p10), %s1913_s15, 6  ;;  %s1926_s11 = smov (!%p161_p10), [#allocation2]  }
  0x12   : > { %1634 = vmatprep.subr.bf16.mxu1 (!%p161_p10), %v1923_v1  ;;  %v1763_v11 = vld [vmem:[%s2352_s1 + $0xd8] sm:$0xff] (!%p161_p10)   ;;  %v1766_v14 = vld [vmem:[%s2352_s1 + $0xe0] sm:$0xff] (!%p161_p10)   ;;  %v1769_v17 = vld [vmem:[%s2352_s1 + $0xe8] sm:$0xff] (!%p161_p10)   ;;  %v315_v34 = vunpack.c.0.s8 (!%p161_p10), %v314_v29  ;;  %s2299_s9 = scalar_lea.hbm (!%p161_p10), %s2354_s3, %s1538_s4 }
  0x13   : > { %v1764_v12 = vld [vmem:[%s2352_s1 + $0x158] sm:$0xff] (!%p161_p10)   ;;  %v1767_v15 = vld [vmem:[%s2352_s1 + $0x160] sm:$0xff] (!%p161_p10)   ;;  %v1770_v18 = vld [vmem:[%s2352_s1 + $0x168] sm:$0xff] (!%p161_p10)  }
  0x14   : > { %1542 = vmatpush3.bf16.msra.mxu0 (!%p161_p10), %v1757_v5  ;;  %v1771_v19 = vld [vmem:[%s2352_s1 + $0x130] sm:$0xff] (!%p161_p10)   ;;  %v1774_v22 = vld [vmem:[%s2352_s1 + $0x138] sm:$0xff] (!%p161_p10)   ;;  %v1783_v31 = vld [vmem:[%s2352_s1 + $0x40] sm:$0xff] (!%p161_p10)   ;;  %v2100_v35 = vsub.s32 (!%p161_p10), %v315_v34, %v317_v30 }
  0x15   : > { %1635 = vmatpush3.bf16.msra.mxu1 (!%p161_p10), %v1758_v6  ;;  %1543 = vmatprep.subr.bf16.mxu0 (!%p161_p10), %v1759_v7  ;;  %v1772_v20 = vld [vmem:[%s2352_s1 + $0xf0] sm:$0xff] (!%p161_p10)   ;;  %v1775_v24 = vld [vmem:[%s2352_s1 + $0xf8] sm:$0xff] (!%p161_p10)   ;;  %v1785_v40 = vld [vmem:[%s2352_s1 + $0x80] sm:$0xff] (!%p161_p10)  }
  0x16   : > { %1636 = vmatprep.subr.bf16.mxu1 %v1923_v1  ;;  %s189_s18 = scalar_select %p188_p11, %s1913_s15, 1  ;;  %v1773_v21 = vld [vmem:[%s2352_s1 + $0x170] sm:$0xff]   ;;  %v1776_v25 = vld [vmem:[%s2352_s1 + $0x178] sm:$0xff]   ;;  %v1784_v44 = vld [vmem:[%s2352_s1] sm:$0xff]  }
  0x17   : > { %v1786_v45 = vld [vmem:[%s2352_s1 + $0x48] sm:$0xff]   ;;  %v1789_v48 = vld [vmem:[%s2352_s1 + $0x50] sm:$0xff]   ;;  %v1792_v51 = vld [vmem:[%s2352_s1 + $0x58] sm:$0xff]  }
  0x18   : > { %1544 = vmatpush3.bf16.msra.mxu0 %v1760_v8  ;;  %s1692_s29 = smul.u32 36, %s189_s18  ;;  %v1788_v46 = vld [vmem:[%s2352_s1 + $0x88] sm:$0xff]   ;;  %v1791_v49 = vld [vmem:[%s2352_s1 + $0x90] sm:$0xff]   ;;  %v1794_v52 = vld [vmem:[%s2352_s1 + $0x98] sm:$0xff]   ;;  %s1847_s18 = sshll.u32 %s1926_s11, 4  ;;  %s1848_s18 = int_to_ptr.vmem [resolvable:$false] %s1847_s18 }
  0x19   : > { %1637 = vmatpush3.bf16.msra.mxu1 %v1761_v9  ;;  %1545 = vmatprep.subr.bf16.mxu0 %v1762_v10  ;;  %v1787_v47 = vld [vmem:[%s2352_s1 + $0x8] sm:$0xff]   ;;  %v1790_v50 = vld [vmem:[%s2352_s1 + $0x10] sm:$0xff]   ;;  %v1793_v53 = vld [vmem:[%s2352_s1 + $0x18] sm:$0xff]  }
  0x1a   : > { %1638 = vmatprep.subr.bf16.mxu1 %v1923_v1  ;;  %s2083_s19 = scalar_lea.vmem %s2351_s0, %s1692_s29  ;;  %v1795_v54 = vld [vmem:[%s2352_s1 + $0x60] sm:$0xff]   ;;  %v1798_v58 = vld [vmem:[%s2352_s1 + $0x68] sm:$0xff]   ;;  %v1801_v3 = vld [vmem:[%s2352_s1 + $0x70] sm:$0xff]   ;;  %s185_s29 = sand.u32 1, %s1905_s13  }
  0x1b   : > { %v1779_v26 = vld [vmem:[%s2083_s19 + $0xa] ss:$6 sps:$4 sm:$0x33]   ;;  %v1782_v27 = vld [vmem:[%s2083_s19 + $0x16] ss:$6 sps:$4 sm:$0x33]  }
  0x1c   : > { %1546 = vmatpush3.bf16.msra.mxu0 %v1763_v11  ;;  %v1777_v32 = vld [vmem:[%s2083_s19 + $0x6] ss:$6 sps:$4 sm:$0xff]   ;;  %v1780_v33 = vld [vmem:[%s2083_s19 + $0x12] ss:$6 sps:$4 sm:$0xff]   ;;  %v326_v38 = vrot.slane %v1779_v26, %v2100_v35  ;;  %v340_v39 = vrot.slane %v1782_v27, %v2100_v35  ;;  %s1354_s30 = sshll.u32 %s185_s29, 2  ;;  %s2305_s15 = scalar_lea.sflag [#allocation3], %s185_s29 }
  0x1d   : > { %1639 = vmatpush3.bf16.msra.mxu1 %v1764_v12  ;;  %1547 = vmatprep.subr.bf16.mxu0 %v1765_v13  ;;  %v319_v36 = vrot.slane %v1777_v32, %v2100_v35  ;;  %v333_v37 = vrot.slane %v1780_v33, %v2100_v35  ;;  %v1796_v55 = vld [vmem:[%s2352_s1 + $0x20] sm:$0xff]   ;;  %v1810_v59 = vld [vmem:[%s2083_s19 + $0xc] ss:$6 sps:$4 sm:$0xff]   ;;  %v1812_v2 = vld [vmem:[%s2083_s19 + $0x10] ss:$6 sps:$4 sm:$0x33]  }
  0x1e   : > { %1640 = vmatprep.subr.bf16.mxu1 %v1923_v1  ;;  %v343_v43 = vcombine.low %v326_v38, %v340_v39  ;;  %v1797_v56 = vld [vmem:[%s2352_s1 + $0xa0] sm:$0xff]   ;;  %v1800_v60 = vld [vmem:[%s2352_s1 + $0xa8] sm:$0xff]   ;;  %v601_v62 = vrot.slane %v1810_v59, %v2100_v35  ;;  %v1803_v5 = vld [vmem:[%s2352_s1 + $0xb0] sm:$0xff]   ;;  %v608_v9 = vrot.slane %v1812_v2, %v2100_v35  ;;  %s187_s5 = scalar_lea.vmem [#allocation2], %s1354_s30 }
  0x1f   : > { %v342_v41 = vcombine.high %v319_v36, %v333_v37  ;;  %v341_v42 = vcombine.low %v319_v36, %v333_v37  ;;  %v1807_v57 = vld [vmem:[%s2083_s19] ss:$6 sps:$4 sm:$0xff]   ;;  %v1809_v0 = vld [vmem:[%s2083_s19 + $0x4] ss:$6 sps:$4 sm:$0x33]   ;;  %v1802_v6 = vld [vmem:[%s2352_s1 + $0x30] sm:$0xff]  }
  0x20   : > { %1548 = vmatpush3.bf16.msra.mxu0 %v1766_v14  ;;  %v587_v61 = vrot.slane %v1807_v57, %v2100_v35  ;;  %v1799_v63 = vld [vmem:[%s2352_s1 + $0x28] sm:$0xff]   ;;  %v1804_v7 = vld [vmem:[%s2352_s1 + $0x78] sm:$0xff]   ;;  %v594_v8 = vrot.slane %v1809_v0, %v2100_v35  ;;  %v1813_v12 = vld [vmem:[%s2352_s1 + $0x1c0] sm:$0xff]   ;;  %s1267_s6 = sshll.u32 %s187_s5, 4  ;;  %s2301_s6 = int_to_ptr.vmem [resolvable:$true] %s1267_s6 }
  0x21   : > { %1641 = vmatpush3.bf16.msra.mxu1 %v1767_v15  ;;  %1549 = vmatprep.subr.bf16.mxu0 %v1768_v16  ;;  %v1806_v10 = vld [vmem:[%s2352_s1 + $0xb8] sm:$0xff]   ;;  %v1815_v15 = vld [vmem:[%s2352_s1 + $0x200] sm:$0xff]   ;;  %v1828_v34 = vld [vmem:[%s2352_s1 + $0x1e8] sm:$0xff]   ;;  %s1843_s10 = scalar_lea.vmem %s2301_s6, 64  ;;  %p1850_p1 = scmp.lt.s32.totalorder %s2301_s6, %s1848_s18 }
  0x22   : > { %1642 = vmatprep.subr.bf16.mxu1 %v1923_v1  ;;  %523 = vmatprep.mubr.bf16.mxu0 %v342_v41  ;;  %v610_v4 = vcombine.high %v587_v61, %v601_v62  ;;  %v1805_v11 = vld [vmem:[%s2352_s1 + $0x38] sm:$0xff]   ;;  %v611_v13 = vcombine.low %v594_v8, %v608_v9  ;;  %v609_v14 = vcombine.low %v587_v61, %v601_v62  ;;  %v1814_v16 = vld [vmem:[%s2352_s1 + $0x180] sm:$0xff]   ;;  %v1830_v36 = vld [vmem:[%s2352_s1 + $0x228] sm:$0xff]   ;;  %p1844_p12 = scmp.ne.s32.totalorder %s2301_s6, %s1843_s10 }
  0x23   : > { %v1822_v23 = vld [vmem:[%s2352_s1 + $0x1d8] sm:$0xff]   ;;  %v1825_v28 = vld [vmem:[%s2352_s1 + $0x1e0] sm:$0xff]   ;;  %v1829_v37 = vld [vmem:[%s2352_s1 + $0x1a8] sm:$0xff]  }
  0x24   : > { %1550 = vmatpush3.bf16.msra.mxu0 %v1769_v17  ;;  %v1816_v17 = vld [vmem:[%s2352_s1 + $0x1c8] sm:$0xff]   ;;  %v1840_v26 = vld [vmem:[%s2083_s19 + $0x18] ss:$6 sps:$4 sm:$0xff]   ;;  %v1831_v38 = vld [vmem:[%s2352_s1 + $0x1f0] sm:$0xff]   ;;  %p1845_p13 = pnand %p1844_p12, %p1989_p4 }
  0x25   : > { %1643 = vmatpush3.bf16.msra.mxu1 %v1770_v18  ;;  %1551 = vmatprep.subr.bf16.mxu0 %v1771_v19  ;;  %v1818_v18 = vld [vmem:[%s2352_s1 + $0x208] sm:$0xff]   ;;  %v1823_v27 = vld [vmem:[%s2352_s1 + $0x198] sm:$0xff]   ;;  %v923_v30 = vrot.slane %v1840_v26, %v2100_v35  ;;  %v1826_v33 = vld [vmem:[%s2352_s1 + $0x1a0] sm:$0xff]  }
  0x26   : > { %1644 = vmatprep.subr.bf16.mxu1 %v1923_v1  ;;  %v1817_v19 = vld [vmem:[%s2352_s1 + $0x188] sm:$0xff]   ;;  %v1839_v39 = vld [vmem:[%s2083_s19 + $0x10] ss:$6 sps:$4 sm:$0x33]   ;;  %p1846_p0 = pneg %p1845_p13 }
  0x27   : > { %v1833_v41 = vld [vmem:[%s2352_s1 + $0x230] sm:$0xff]  }
  0x28   : > { %1552 = vmatpush3.bf16.msra.mxu0 %v1772_v20  ;;  %v1819_v20 = vld [vmem:[%s2352_s1 + $0x1d0] sm:$0xff]  }
  0x29   : > { %1645 = vmatpush3.bf16.msra.mxu1 %v1773_v21  ;;  %1553 = vmatprep.subr.bf16.mxu0 %v1774_v22  ;;  %v1820_v21 = vld [vmem:[%s2352_s1 + $0x190] sm:$0xff]  }
  0x2a   : > { %1646 = vmatprep.subr.bf16.mxu1 %v1923_v1  ;;  %v1821_v22 = vld [vmem:[%s2352_s1 + $0x210] sm:$0xff]  }
  0x2c   : > { %1554 = vmatpush3.bf16.msra.mxu0 %v1775_v24  ;;  %v1824_v24 = vld [vmem:[%s2352_s1 + $0x218] sm:$0xff]  }
  0x2d   : > { %1647 = vmatpush3.bf16.msra.mxu1 %v1776_v25  ;;  %1570 = vmatprep.subr.bf16.mxu0 %v1783_v31  ;;  %v1837_v25 = vld [vmem:[%s2083_s19 + $0xc] ss:$6 sps:$4 sm:$0xff]   ;;  %v1827_v31 = vld [vmem:[%s2352_s1 + $0x220] sm:$0xff]  }
  0x2e   : > { %1652 = vmatprep.subr.bf16.mxu1 %v1923_v1  ;;  %v909_v29 = vrot.slane %v1837_v25, %v2100_v35 }
  0x2f   : > { %524 = vmatmul.mubr.bf16.vlgmr.msra.gmra.mrb[0].mxu0 %v341_v42  ;;  %v1832_v42 = vld [vmem:[%s2352_s1 + $0x1b0] sm:$0xff]  }
  0x30   : > { %1649 = vmatmul.mubr.bf16.vlgmr.msra.gmra.mrb[0].mxu1 %v343_v43  ;;  %1571 = vmatpush3.bf16.msra.mxu0 %v1784_v44  ;;  %v932_v32 = vcombine.high %v909_v29, %v923_v30  ;;  %v1834_v43 = vld [vmem:[%s2352_s1 + $0x1f8] sm:$0xff]   ;;  %v916_v44 = vrot.slane %v1839_v39, %v2100_v35 }
  0x31   : > { %1653 = vmatpush3.bf16.msra.mxu1 %v1785_v40  ;;  %1572 = vmatprep.subr.bf16.mxu0 %v1786_v45  ;;  %v1842_v40 = vld [vmem:[%s2083_s19 + $0x1c] ss:$6 sps:$4 sm:$0x33]   ;;  %s1849_s19 = scalar_lea.vmem %s1848_s18, 128 }
  0x32   : > { %1654 = vmatprep.subr.bf16.mxu1 %v1923_v1  ;;  %1668 = vmatprep.mubr.msk.bf16.mxu1 %vm1924_vm0, %v1923_v1  ;;  %v930_v45 = vrot.slane %v1842_v40, %v2100_v35  ;;  %p1851_p2 = scmp.lt.s32.totalorder %s1849_s19, %s1843_s10 }
  0x33   : > { %791 = vmatprep.mubr.bf16.mxu0 %v610_v4 }
  0x34   : > { %1573 = vmatpush3.bf16.msra.mxu0 %v1787_v47  ;;  %v1835_v47 = vld [vmem:[%s2352_s1 + $0x1b8] sm:$0xff]   ;;  %p1852_p3 = por %p1851_p2, %p1850_p1 }
  0x35   : > { %1655 = vmatpush3.bf16.msra.mxu1 %v1788_v46  ;;  %1574 = vmatprep.subr.bf16.mxu0 %v1789_v48  ;;  %v1836_v46 = vld [vmem:[%s2352_s1 + $0x238] sm:$0xff]   ;;  %v933_v48 = vcombine.low %v916_v44, %v930_v45 }
  0x36   : > { %1656 = vmatprep.subr.bf16.mxu1 %v1923_v1  ;;  %p1853_p5 = pnand %p1852_p3, %p1846_p0 }
  0x38   : > { %1575 = vmatpush3.bf16.msra.mxu0 %v1790_v50 }
  0x39   : > { %1657 = vmatpush3.bf16.msra.mxu1 %v1791_v49  ;;  %1576 = vmatprep.subr.bf16.mxu0 %v1792_v51  ;;  %v931_v49 = vcombine.low %v909_v29, %v923_v30 }
  0x3a   : > { %1658 = vmatprep.subr.bf16.mxu1 %v1923_v1 }
  0x3c   : > { %1577 = vmatpush3.bf16.msra.mxu0 %v1793_v53 }
  0x3d   : > { %1659 = vmatpush3.bf16.msra.mxu1 %v1794_v52  ;;  %1578 = vmatprep.subr.bf16.mxu0 %v1795_v54 }
  0x3e   : > { %1660 = vmatprep.subr.bf16.mxu1 %v1923_v1 }
  0x40   : > { %1579 = vmatpush3.bf16.msra.mxu0 %v1796_v55 }
  0x41   : > { %1661 = vmatpush3.bf16.msra.mxu1 %v1797_v56  ;;  %1580 = vmatprep.subr.bf16.mxu0 %v1798_v58 }
  0x42   : > { %1662 = vmatprep.subr.bf16.mxu1 %v1923_v1 }
  0x44   : > { %1581 = vmatpush3.bf16.msra.mxu0 %v1799_v63 }
  0x45   : > { %1663 = vmatpush3.bf16.msra.mxu1 %v1800_v60  ;;  %1582 = vmatprep.subr.bf16.mxu0 %v1801_v3 }
  0x46   : > { %1664 = vmatprep.subr.bf16.mxu1 %v1923_v1 }
  0x48   : > { %1583 = vmatpush3.bf16.msra.mxu0 %v1802_v6 }
  0x49   : > { %1665 = vmatpush3.bf16.msra.mxu1 %v1803_v5  ;;  %1584 = vmatprep.subr.bf16.mxu0 %v1804_v7 }
  0x4a   : > { %1666 = vmatprep.subr.bf16.mxu1 %v1923_v1 }
  0x4c   : > { %1585 = vmatpush3.bf16.msra.mxu0 %v1805_v11 }
  0x4d   : > { %1667 = vmatpush3.bf16.msra.mxu1 %v1806_v10  ;;  %1601 = vmatprep.subr.bf16.mxu0 %v1813_v12 }
  0x4e   : > { %1672 = vmatprep.subr.bf16.mxu1 %v1923_v1 }
  0x4f   : > { %792 = vmatmul.mubr.bf16.vlgmr.msra.gmra.mrb[4].mxu0 %v609_v14 }
  0x50   : > { %1669 = vmatmul.mubr.bf16.vlgmr.msra.gmra.mrb[4].mxu1 %v611_v13  ;;  %1602 = vmatpush3.bf16.msra.mxu0 %v1814_v16 }
  0x51   : > { %1673 = vmatpush3.bf16.msra.mxu1 %v1815_v15  ;;  %1603 = vmatprep.subr.bf16.mxu0 %v1816_v17 }
  0x52   : > { %1674 = vmatprep.subr.bf16.mxu1 %v1923_v1  ;;  %1688 = vmatprep.mubr.msk.bf16.mxu1 %vm1924_vm0, %v1923_v1 }
  0x53   : > { %1113 = vmatprep.mubr.bf16.mxu0 %v932_v32 }
  0x54   : > { %1604 = vmatpush3.bf16.msra.mxu0 %v1817_v19 }
  0x55   : > { %1675 = vmatpush3.bf16.msra.mxu1 %v1818_v18  ;;  %1605 = vmatprep.subr.bf16.mxu0 %v1819_v20 }
  0x56   : > { %1676 = vmatprep.subr.bf16.mxu1 %v1923_v1 }
  0x58   : > { %1606 = vmatpush3.bf16.msra.mxu0 %v1820_v21 }
  0x59   : > { %1677 = vmatpush3.bf16.msra.mxu1 %v1821_v22  ;;  %1607 = vmatprep.subr.bf16.mxu0 %v1822_v23  ;;  %v1532_v23 = vld [vmem:[%s2353_s2] ss:$0 sm:$0xff] }
  0x5a   : > { %1678 = vmatprep.subr.bf16.mxu1 %v1923_v1 }
  0x5c   : > { %1608 = vmatpush3.bf16.msra.mxu0 %v1823_v27 }
  0x5d   : > { %1679 = vmatpush3.bf16.msra.mxu1 %v1824_v24  ;;  %1609 = vmatprep.subr.bf16.mxu0 %v1825_v28 }
  0x5e   : > { %1680 = vmatprep.subr.bf16.mxu1 %v1923_v1 }
  0x60   : > { %1610 = vmatpush3.bf16.msra.mxu0 %v1826_v33 }
  0x61   : > { %1681 = vmatpush3.bf16.msra.mxu1 %v1827_v31  ;;  %1611 = vmatprep.subr.bf16.mxu0 %v1828_v34 }
  0x62   : > { %1682 = vmatprep.subr.bf16.mxu1 %v1923_v1 }
  0x64   : > { %1612 = vmatpush3.bf16.msra.mxu0 %v1829_v37 }
  0x65   : > { %1683 = vmatpush3.bf16.msra.mxu1 %v1830_v36  ;;  %1613 = vmatprep.subr.bf16.mxu0 %v1831_v38 }
  0x66   : > { %1684 = vmatprep.subr.bf16.mxu1 %v1923_v1 }
  0x68   : > { %1614 = vmatpush3.bf16.msra.mxu0 %v1832_v42 }
  0x69   : > { %1685 = vmatpush3.bf16.msra.mxu1 %v1833_v41  ;;  %1615 = vmatprep.subr.bf16.mxu0 %v1834_v43 }
  0x6a   : > { %1686 = vmatprep.subr.bf16.mxu1 %v1923_v1 }
  0x6c   : > { %1616 = vmatpush3.bf16.msra.mxu0 %v1835_v47 }
  0x6d   : > { %1687 = vmatpush3.bf16.msra.mxu1 %v1836_v46 }
  0x6f   : > { %1114 = vmatmul.mubr.bf16.vlgmr.msra.gmra.mrb[8].mxu0 %v931_v49 }
  0x70   : > { %1689 = vmatmul.mubr.bf16.vlgmr.msra.gmra.mrb[8].mxu1 %v933_v48 }
 0x102   : > { %v1555_v51 = vpop.f32.mrb[0].mxu0 }
 0x103   : > { %v566_v50 = vpop.f32.mrb[0].mxu1  ;;  %v1556_v53 = vpop.f32.mrb[1].mxu0 }
 0x104   : > { %v1650_v52 = vpop.f32.mrb[1].mxu1  ;;  %v1557_v55 = vadd.f32 %v1556_v53, %v1555_v51  ;;  %v1558_v56 = vpop.f32.mrb[2].mxu0 }
 0x105   : > { %v569_v54 = vpop.f32.mrb[2].mxu1  ;;  %v1559_v1 = vpop.f32.mrb[3].mxu0 }
 0x106   : > { %v1651_v57 = vpop.f32.mrb[3].mxu1  ;;  %v567_v58 = vadd.f32 %v1557_v55, %v566_v50  ;;  %v1560_v59 = vadd.f32 %v1559_v1, %v1558_v56 }
 0x108   : > { %v570_v60 = vadd.f32 %v1560_v59, %v569_v54 }
 0x122   : > { %v1586_v62 = vpop.f32.mrb[4].mxu0 }
 0x123   : > { %v834_v61 = vpop.f32.mrb[4].mxu1  ;;  %v1587_v0 = vpop.f32.mrb[5].mxu0 }
 0x124   : > { %v1670_v63 = vpop.f32.mrb[5].mxu1  ;;  %v1588_v3 = vadd.f32 %v1587_v0, %v1586_v62  ;;  %v1589_v4 = vpop.f32.mrb[6].mxu0 }
 0x125   : > { %v837_v2 = vpop.f32.mrb[6].mxu1  ;;  %v1590_v6 = vpop.f32.mrb[7].mxu0 }
 0x126   : > { %v1671_v5 = vpop.f32.mrb[7].mxu1  ;;  %v794_v7 = vadd.f32 %v1588_v3, %v567_v58  ;;  %v1591_v8 = vadd.f32 %v1590_v6, %v1589_v4 }
 0x128   : > { %v835_v9 = vadd.f32 %v834_v61, %v794_v7  ;;  %v797_v10 = vadd.f32 %v1591_v8, %v570_v60 }
 0x12a   : > { %v838_v11 = vadd.f32 %v837_v2, %v797_v10 }
 0x142   : > { %v1617_v13 = vpop.f32.mrb[8].mxu0 }
 0x143   : > { %v1156_v12 = vpop.f32.mrb[8].mxu1  ;;  %v1618_v15 = vpop.f32.mrb[9].mxu0 }
 0x144   : > { %v1690_v14 = vpop.f32.mrb[9].mxu1  ;;  %v1619_v17 = vadd.f32 %v1618_v15, %v1617_v13  ;;  %v1620_v18 = vpop.f32.mrb[10].mxu0 }
 0x145   : > { %v1159_v16 = vpop.f32.mrb[10].mxu1  ;;  %v1621_v20 = vpop.f32.mrb[11].mxu0 }
 0x146   : > { %v1691_v19 = vpop.f32.mrb[11].mxu1  ;;  %v1157_v21 = vadd.f32 %v1619_v17, %v1156_v12  ;;  %v1622_v22 = vadd.f32 %v1621_v20, %v1620_v18 }
 0x148   : > { %v1163_v24 = vadd.f32 %v1157_v21, %v835_v9  ;;  %v1160_v25 = vadd.f32 %v1622_v22, %v1159_v16 }
 0x14a   : > { %v1172_v26 = vadd.f32 %v1532_v23, %v1163_v24  ;;  %v1164_v27 = vadd.f32 %v1160_v25, %v838_v11 }
 0x14c   : > { %v1174_v28 = vmax.f32 %v1172_v26, 0.0  ;;  %v1173_v29 = vadd.f32 %v1532_v23, %v1164_v27 }
 0x14e   : > { %v1178_v30 = vcombine.high %v1174_v28, %v1174_v28  ;;  %v1175_v31 = vmax.f32 %v1173_v29, 0.0  ;;  %v1183_v32 = vsel %vm1182_vm1, %v1174_v28, -inf }
 0x150   : > { %v1184_v33 = vsel %vm1182_vm1, %v1178_v30, -inf  ;;  %v1179_v34 = vcombine.high %v1175_v31, %v1175_v31  ;;  %v1186_v37 = vsel %vm1182_vm1, %v1175_v31, -inf }
 0x151   : > { %v1185_v36 = vmax.f32 %v1183_v32, %v1184_v33 }
 0x152   : > { %v1187_v38 = vsel %vm1182_vm1, %v1179_v34, -inf }
 0x153   : > { %v1197_v39 = vrot.slane %v1185_v36, %v2100_v35  ;;  %v1188_v40 = vmax.f32 %v1186_v37, %v1187_v38 }
 0x155   : > { %v1198_v41 = vcombine.high %v1197_v39, %v1197_v39  ;;  %v1212_v42 = vsel %vm1211_vm2, %v1197_v39, -inf  ;;  %v1205_v43 = vrot.slane %v1188_v40, %v2100_v35 }
 0x156   : > { %v1213_v44 = vrot.slane %v1212_v42, 4 }
 0x157   : > { %v1219_v45 = vsel %vm1211_vm2, %v1198_v41, -inf  ;;  %v1206_v46 = vcombine.high %v1205_v43, %v1205_v43  ;;  %v1226_v47 = vsel %vm1211_vm2, %v1205_v43, -inf }
 0x158   : > { %v1214_v48 = vmax.f32 %v1212_v42, %v1213_v44  ;;  %v1220_v49 = vrot.slane %v1219_v45, 4  ;;  %v1227_v50 = vrot.slane %v1226_v47, 4 }
 0x159   : > { %v1233_v51 = vsel %vm1211_vm2, %v1206_v46, -inf }
 0x15a   : > { %v1215_v52 = vrot.slane %v1214_v48, 2  ;;  %v1221_v53 = vmax.f32 %v1219_v45, %v1220_v49  ;;  %v1228_v54 = vmax.f32 %v1226_v47, %v1227_v50  ;;  %v1234_v55 = vrot.slane %v1233_v51, 4 }
 0x15c   : > { %v1216_v35 = vmax.f32 %v1214_v48, %v1215_v52  ;;  %v1222_v56 = vrot.slane %v1221_v53, 2  ;;  %v1229_v57 = vrot.slane %v1228_v54, 2  ;;  %v1235_v1 = vmax.f32 %v1233_v51, %v1234_v55 }
 0x15e   : > { %v1217_v58 = vrot.slane %v1216_v35, 1  ;;  %v1223_v59 = vmax.f32 %v1221_v53, %v1222_v56  ;;  %v1230_v60 = vmax.f32 %v1228_v54, %v1229_v57  ;;  %v1236_v61 = vrot.slane %v1235_v1, 2 }
 0x160   : > { %v1231_v62 = vrot.slane %v1230_v60, 1  ;;  %v1237_v63 = vmax.f32 %v1235_v1, %v1236_v61  ;;  %v1224_v0 = vrot.slane %v1223_v59, 1  ;;  %v1218_v2 = vmax.f32 %v1216_v35, %v1217_v58 }
 0x162   : > { %v1225_v3 = vmax.f32 %v1223_v59, %v1224_v0  ;;  %v1238_v4 = vrot.slane %v1237_v63, 1  ;;  %v1232_v5 = vmax.f32 %v1230_v60, %v1231_v62 }
 0x164   : > { %v1239_v6 = vmax.f32 %v1237_v63, %v1238_v4  ;;  %v1245_v7 = vsel %vm1244_vm3, %v1225_v3, %v1218_v2 }
 0x165   : > { %1249 = vst [vmem:[%s187_s5] sm:$0x3] %v1245_v7 }
 0x166   : > { %v1246_v8 = vsel %vm1244_vm3, %v1239_v6, %v1232_v5 }
 0x167   : > { %1250 = vst [vmem:[%s187_s5 + $0x2] sm:$0x3] %v1246_v8 }
 0x168   : > { %1856 = shalt.err (!%p1853_p5)
}
 0x169   : > { %s1857_s21 = scalar_lea.hbm %s2299_s9, 64  ;;  %s1861_s27 = scalar_lea.hbm %s2354_s3, 128 }
 0x16a   : > { %p1858_p6 = scmp.ne.s32.totalorder %s2299_s9, %s1857_s21  ;;  %p1862_p10 = scmp.lt.u32.totalorder %s2299_s9, %s2354_s3 }
 0x16b   : > { %p1863_p11 = scmp.lt.u32.totalorder %s1861_s27, %s1857_s21  ;;  %p1865_p13 = scmp.lt.u32.totalorder %s1857_s21, %s2299_s9 }
 0x16c   : > { %p1859_p7 = pnand %p1858_p6, %p1989_p4 }
 0x16d   : > { %p1864_p12 = por %p1863_p11, %p1862_p10 }
 0x16e   : > { %p1860_p9 = pneg %p1859_p7 }
 0x16f   : > { %p1866_p0 = por %p1865_p13, %p1864_p12 }
 0x171   : > { %p1867_p1 = pnand %p1866_p0, %p1860_p9 }
 0x173   : > { %1870 = shalt.err (!%p1867_p1)
}
 0x174   : > { %s1927_s30 = smov 32   ;;  %s1928_s4 = smov 2  }
 0x175   : > { %1693 = dma.vmem_to_hbm [thread:$0]  (%p1989_p4), %s2301_s6, 64, %s2299_s9, %s2305_s15, %s1927_s30, %s1927_s30, %s1928_s4  }
 0x176 PF: > { %p1699_p2 = scmp.ge.s32.totalorder %s1921_s17, 2  ;;  %s1282_s5 = sand.u32 1, %s1901_s12  }
 0x177   : > { %s1283_s7 = scalar_lea.sflag [#allocation3], %s1282_s5 }
 0x178   : > { %p1696_p3 = pnand %p1699_p2, %p1996_p8 }
 0x17a   : > { %1896 = dma.done.wait (!%p1696_p3), %s1283_s7, 64  }
 0x17b   : > { %1898 = vsyncadd (!%p1696_p3), %s1283_s7, 4294967232  ;;  %s16_s17 = sadd.s32 1, %s1921_s17   ;;  %s2357_s12 = smov %s1905_s13 }
 0x17c   : > { %p13_p5 = scmp.ge.s32.totalorder %s16_s17, 4   ;;  %s2358_s13 = smov %s1909_s14 }
 0x17d   : > { %s2359_s14 = smov %s2002_s25  ;;  %s2360_s15 = smov %s1917_s16 }
 0x17e   : > { %s2361_s16 = smov %s2363_s20  ;;  %15 = sbr.rel (!%p13_p5) target bundleno = 4 (0x4), region = 71 }
 0x185   :  { %1288 = vsyncpa [#allocation3], 1 }
 0x186   :  { %1290 = vsyncpa [#allocation3 + $0x1], 1 }

</bundles_post_ra>
